<compile_context>
chip_gen: v5e
topology: v5e:2x2
jax: 0.10.0
libtpu: 0.0.40
codegen_flags: <defaults>
</compile_context>

<pallas_src>
import jax
import jax.numpy as jnp
from jax.experimental import pallas as pl
from jax.experimental.pallas import tpu as pltpu


# --------------------------------------------------------------------------
# Weight preprocessing (runs as tiny XLA ops inside the jitted forward)
# --------------------------------------------------------------------------

def _band_weight(w, W, *, pooled_sparse):
    """Banded weight for the in-kernel kh-loop direct conv.

    Column index = wo*Cout + co.  Row index = wi*Cin + ci where wi indexes:
      * pooled_sparse=False: the conv-input width grid [0, W)              (Kred = W*Cin)
      * pooled_sparse=True : the PRE-pool width grid [0, 2W-1); pair-max values live at
        even wi, odd wi rows are zero so in-kernel garbage there is ignored
        (Kred = (2W-1)*Cin).
    """
    k, _, Cin, Cout = w.shape
    p = k // 2
    if pooled_sparse:
        wi = jnp.arange(2 * W - 1)
        src, valid = wi // 2, (wi % 2 == 0)
    else:
        wi = jnp.arange(W)
        src, valid = wi, None
    wo, kw = jnp.arange(W), jnp.arange(k)
    cond = (kw[None, None, :] == src[:, None, None] - wo[None, :, None] + p)
    if valid is not None:
        cond = cond & valid[:, None, None]
    band = cond.astype(jnp.float32)                        # (Wi, W, k)
    wb = jnp.einsum('iok,hkcd->hicod', band, w.astype(jnp.float32))
    return wb.reshape(k, int(wi.shape[0]) * Cin, W * Cout).astype(jnp.bfloat16)


def _fold_bn(scale, bias, W):
    """BatchNorm(eval) folded to a per-channel affine, tiled over the W lane fold."""
    return jnp.stack([jnp.tile(scale, W), jnp.tile(bias, W)], axis=0).astype(jnp.float32)


def _upsample_mats(H, W, C):
    """0/1 duplication matrices for 2x nearest upsample: out = E @ (y @ D)."""
    ho = jnp.arange(2 * H)
    e = (ho[:, None] // 2 == jnp.arange(H)[None, :]).astype(jnp.float32)      # (2H, H)
    q = jnp.arange(2 * W * C)
    r = jnp.arange(W * C)
    d = ((q[None, :] // (2 * C) == r[:, None] // C)
         & (q[None, :] % C == r[:, None] % C)).astype(jnp.float32)            # (WC, 2WC)
    return d, e


# --------------------------------------------------------------------------
# Pallas kernels
# --------------------------------------------------------------------------

def _make_down_kernel(H, W, Cin, Cout, k):
    """MaxPool2d(2,2) + Conv2d(k,'same',bias=False) + BN(eval) + ReLU; one image / step."""
    p = k // 2
    Lr = (2 * W - 1) * Cin          # pre-pool width grid minus the last (unpaired) column
    Nl = W * Cout

    def kernel(x_ref, wb_ref, sb_ref, o_ref):
        # -- 2x2 max pool prologue -------------------------------------------------
        # W-pair max: two lane-offset loads of the same row strip (pair max lands at
        # even-w lane blocks; odd-w blocks are garbage and hit zero weight-band rows).
        a = x_ref[0, :, pl.ds(0, Lr)]                       # (2H, Lr) bf16
        b = x_ref[0, :, pl.ds(Cin, Lr)]
        wmax = jnp.maximum(a, b)
        # H-pair max: sublane-split reduce.
        pooled = jnp.max(wmax.reshape(H, 2, Lr), axis=1)    # (H, Lr) bf16
        # -- 'same' H zero padding + direct conv: k banded MXU dots -----------------
        zrow = jnp.zeros((p, Lr), pooled.dtype)
        xh = jnp.concatenate([zrow, pooled, zrow], axis=0)  # (H + 2p, Lr)
        acc = jnp.zeros((H, Nl), jnp.float32)
        for kh in range(k):                                 # static unroll, resident weight
            acc = acc + jnp.dot(xh[kh:kh + H, :], wb_ref[kh],
                                preferred_element_type=jnp.float32)
        # -- folded BatchNorm affine + ReLU epilogue ---------------------------------
        y = jnp.maximum(acc * sb_ref[0:1, :] + sb_ref[1:2, :], 0.0)
        o_ref[0] = y.astype(o_ref.dtype)

    return kernel


def _make_merge_kernel(H, W, Cin, Cout, k, has_skip):
    """Conv2d(k,'same') + BN(eval) + ReLU [+ skip add] + fused 2x nearest upsample."""
    p = k // 2
    Kred = W * Cin
    Nl = W * Cout

    def kernel(x_ref, wb_ref, sb_ref, d_ref, e_ref, *rest):
        if has_skip:
            skip_ref, o_ref = rest
        else:
            (o_ref,) = rest
        xin = x_ref[0]                                       # (H, W*Cin) bf16
        zrow = jnp.zeros((p, Kred), xin.dtype)
        xh = jnp.concatenate([zrow, xin, zrow], axis=0)      # (H + 2p, W*Cin)
        acc = jnp.zeros((H, Nl), jnp.float32)
        for kh in range(k):                                  # static unroll, resident weight
            acc = acc + jnp.dot(xh[kh:kh + H, :], wb_ref[kh],
                                preferred_element_type=jnp.float32)
        y = jnp.maximum(acc * sb_ref[0:1, :] + sb_ref[1:2, :], 0.0)   # BN + ReLU (f32)
        if has_skip:
            y = y + skip_ref[0]                              # fused merge-ladder add (f32)
        # fused 2x nearest upsample via 0/1 duplication matmuls (layout-safe, exact).
        yw = jnp.dot(y, d_ref[...], preferred_element_type=jnp.float32)   # (H,  2*Nl)
        yu = jnp.dot(e_ref[...], yw, preferred_element_type=jnp.float32)  # (2H, 2*Nl)
        o_ref[0] = yu.astype(o_ref.dtype)

    return kernel


# --------------------------------------------------------------------------
# Wrappers around pallas_call
# --------------------------------------------------------------------------

def down_pool_conv(x_nhwc, p):
    """MaxPool2d(2,2) -> Conv2d(k,'same') -> BN(eval) -> ReLU, fused in one pallas_call."""
    w, scale, bias = p["w"], p["scale"], p["bias"]
    k, _, Cin, Cout = w.shape
    N, H2, W2, _ = x_nhwc.shape
    H, W = H2 // 2, W2 // 2
    x = x_nhwc[:, :2 * H, :2 * W, :]                           # floor() like PyTorch
    x2d = x.reshape(N, 2 * H, 2 * W * Cin).astype(jnp.bfloat16)   # free regroup, lane = row
    Lr, Nl = (2 * W - 1) * Cin, W * Cout
    wb = _band_weight(w, W, pooled_sparse=True)                # (k, Lr, Nl) bf16
    sb = _fold_bn(scale, bias, W)                              # (2, Nl) f32

    out = pl.pallas_call(
        _make_down_kernel(H, W, Cin, Cout, k),
        out_shape=jax.ShapeDtypeStruct((N, H, Nl), jnp.bfloat16),
        grid=(N,),
        in_specs=[pl.BlockSpec((1, 2 * H, 2 * W * Cin), lambda n: (n, 0, 0)),
                  pl.BlockSpec((k, Lr, Nl), lambda n: (0, 0, 0)),    # resident weight
                  pl.BlockSpec((2, Nl), lambda n: (0, 0))],
        out_specs=pl.BlockSpec((1, H, Nl), lambda n: (n, 0, 0)),
        compiler_params=pltpu.CompilerParams(dimension_semantics=("parallel",)),
        cost_estimate=pl.CostEstimate(
            flops=2 * N * k * H * Lr * Nl, transcendentals=0,
            bytes_accessed=int(x2d.size * 2 + wb.size * 2 + sb.size * 4
                               + N * H * Nl * 2)),
    )(x2d, wb, sb)
    return out.reshape(N, H, W, Cout)


def merge_conv_up(x_nhwc, p, skip=None):
    """Conv2d(k,'same') -> BN(eval) -> ReLU [-> + skip] -> 2x nearest upsample, fused."""
    w, scale, bias = p["w"], p["scale"], p["bias"]
    k, _, Cin, Cout = w.shape
    N, H, W, _ = x_nhwc.shape
    Kred, Nl = W * Cin, W * Cout
    x2d = x_nhwc.reshape(N, H, Kred).astype(jnp.bfloat16)
    wb = _band_weight(w, W, pooled_sparse=False)               # (k, Kred, Nl) bf16
    sb = _fold_bn(scale, bias, W)                              # (2, Nl) f32
    dmat, emat = _upsample_mats(H, W, Cout)                    # (Nl, 2Nl), (2H, H) f32

    in_specs = [pl.BlockSpec((1, H, Kred), lambda n: (n, 0, 0)),
                pl.BlockSpec((k, Kred, Nl), lambda n: (0, 0, 0)),   # resident weight
                pl.BlockSpec((2, Nl), lambda n: (0, 0)),
                pl.BlockSpec((Nl, 2 * Nl), lambda n: (0, 0)),
                pl.BlockSpec((2 * H, H), lambda n: (0, 0))]
    args = [x2d, wb, sb, dmat, emat]
    if skip is not None:
        # TODO(synk): mm.Pad ("fix_mismatch") exact semantics unknown; implemented as a
        # bottom/right zero pad of the (never larger) upsampled skip.  Identity here.
        sh, sw = skip.shape[1], skip.shape[2]
        if (sh, sw) != (H, W):
            skip = jnp.pad(skip, ((0, 0), (0, H - sh), (0, W - sw), (0, 0)))
        skip2d = skip.reshape(N, H, Nl).astype(jnp.float32)
        in_specs.append(pl.BlockSpec((1, H, Nl), lambda n: (n, 0, 0)))
        args.append(skip2d)

    out = pl.pallas_call(
        _make_merge_kernel(H, W, Cin, Cout, k, skip is not None),
        out_shape=jax.ShapeDtypeStruct((N, 2 * H, 2 * Nl), jnp.float32),
        grid=(N,),
        in_specs=in_specs,
        out_specs=pl.BlockSpec((1, 2 * H, 2 * Nl), lambda n: (n, 0, 0)),
        compiler_params=pltpu.CompilerParams(dimension_semantics=("parallel",)),
        cost_estimate=pl.CostEstimate(
            flops=2 * N * (k * H * Kred * Nl + H * Nl * 2 * Nl + 2 * H * H * 2 * Nl),
            transcendentals=0,
            bytes_accessed=int(x2d.size * 2 + wb.size * 2 + sb.size * 4
                               + dmat.size * 4 + emat.size * 4
                               + N * 2 * H * 2 * Nl * 4
                               + (0 if skip is None else N * H * Nl * 4))),
    )(*args)
    return out.reshape(N, 2 * H, 2 * W, Cout)


# --------------------------------------------------------------------------
# Parameters (deterministic synthetic init; BN folded to affine, eval mode)
# --------------------------------------------------------------------------

def make_conv_bn_params(key, k, cin, cout):
    kw_, kg, kb, km, kv = jax.random.split(key, 5)
    fan_in = k * k * cin
    w = jax.random.normal(kw_, (k, k, cin, cout), jnp.float32) / jnp.sqrt(fan_in)
    gamma = jax.random.uniform(kg, (cout,), jnp.float32, 0.5, 1.5)
    beta = jax.random.normal(kb, (cout,), jnp.float32) * 0.1
    mean = jax.random.normal(km, (cout,), jnp.float32) * 0.1
    var = jax.random.uniform(kv, (cout,), jnp.float32, 0.5, 1.5)
    scale = gamma / jnp.sqrt(var + 1e-5)
    bias = beta - mean * scale
    return {"w": w, "scale": scale, "bias": bias}


def init_conv_branch_params(key, in_channels, out_channels):
    mid = out_channels // 4
    ks = jax.random.split(key, 6)
    return {
        "bigconv1":   make_conv_bn_params(ks[0], 7, in_channels, mid),
        "midconv1":   make_conv_bn_params(ks[1], 5, mid, mid),
        "smallconv1": make_conv_bn_params(ks[2], 3, mid, mid),
        "bigconv2":   make_conv_bn_params(ks[3], 7, mid, out_channels),
        "midconv2":   make_conv_bn_params(ks[4], 5, mid, out_channels),
        "smallconv2": make_conv_bn_params(ks[5], 3, mid, out_channels),
    }


# --------------------------------------------------------------------------
# Forward pass
# --------------------------------------------------------------------------

def conv_branch_forward(x_nhwc, params):
    # down path (pool fused into each conv kernel)
    x1 = down_pool_conv(x_nhwc, params["bigconv1"])      # H/2, mid
    x2 = down_pool_conv(x1, params["midconv1"])          # H/4, mid
    x3 = down_pool_conv(x2, params["smallconv1"])        # H/8, mid
    # merge ladder: each kernel fuses conv+BN+ReLU (+post-activation skip add) and the
    # following 2x nearest upsample, so no upsampled tensor is materialised in HBM.
    # TODO(synk): up.Upsample source not given; assumed parameter-free 2x nearest-neighbor.
    u3 = merge_conv_up(x3, params["smallconv2"])               # up3(smallconv2(x3))       H/4
    u2 = merge_conv_up(x2, params["midconv2"], skip=u3)        # up2(midconv2(x2) + u3)    H/2
    y = merge_conv_up(x1, params["bigconv2"], skip=u2)         # up1(bigconv2(x1) + u2)    H
    return y


@jax.jit
def conv_branch_nchw(x_nchw, params):
    x_nhwc = jnp.transpose(x_nchw, (0, 2, 3, 1)).astype(jnp.bfloat16)   # NCHW -> NHWC, bf16
    y_nhwc = conv_branch_forward(x_nhwc, params)                        # f32 out
    return jnp.transpose(y_nhwc, (0, 3, 1, 2))                          # NHWC -> NCHW


# --------------------------------------------------------------------------

if __name__ == "__main__":
    key = jax.random.PRNGKey(0)
    k_params, k_x = jax.random.split(key)

    in_channels, out_channels = 4, 8
    N, H, W = 2, 16, 16

    params = init_conv_branch_params(k_params, in_channels, out_channels)
    x = jax.random.normal(k_x, (N, in_channels, H, W), jnp.float32)  # NCHW like PyTorch

    y = conv_branch_nchw(x, params)
    jax.block_until_ready(y)

    assert y.shape == (N, out_channels, H, W), y.shape
    print("KERNEL_OK")
</pallas_src>

<mosaic_0001>
module attributes {stable_mosaic.version = 11 : i64} {
  func.func @kernel(%arg0: i32, %arg1: memref<1x16x64xbf16, #tpu.memory_space<vmem>>, %arg2: memref<7x60x16xbf16, #tpu.memory_space<vmem>>, %arg3: memref<2x16xf32, #tpu.memory_space<vmem>>, %arg4: memref<1x8x16xbf16, #tpu.memory_space<vmem>>) attributes {dimension_semantics = [#tpu.dimension_semantics<parallel>], iteration_bounds = array<i64: 2>, scalar_prefetch = 0 : i64, scratch_operands = 0 : i64, tpu.core_type = #tpu.core_type<tc>, window_params = [{transform_indices = @transform_0, window_bounds = array<i64: 1, 16, 64>}, {pipeline_mode = #tpu.pipeline_mode<synchronous>, transform_indices = @transform_1, window_bounds = array<i64: 7, 60, 16>}, {pipeline_mode = #tpu.pipeline_mode<synchronous>, transform_indices = @transform_2, window_bounds = array<i64: 2, 16>}, {transform_indices = @transform_3, window_bounds = array<i64: 1, 8, 16>}]} {
    %c0 = arith.constant 0 : index
    %c0_0 = arith.constant 0 : index
    %c0_1 = arith.constant 0 : index
    %0 = vector.load %arg1[%c0, %c0_0, %c0_1] : memref<1x16x64xbf16, #tpu.memory_space<vmem>>, vector<1x16x60xbf16>
    %1 = vector.shape_cast %0 : vector<1x16x60xbf16> to vector<16x60xbf16>
    %c0_2 = arith.constant 0 : index
    %c0_3 = arith.constant 0 : index
    %c4 = arith.constant 4 : index
    %2 = vector.load %arg1[%c0_2, %c0_3, %c4] : memref<1x16x64xbf16, #tpu.memory_space<vmem>>, vector<1x16x60xbf16>
    %3 = vector.shape_cast %2 : vector<1x16x60xbf16> to vector<16x60xbf16>
    %4 = arith.maximumf %1, %3 : vector<16x60xbf16>
    %5 = vector.shape_cast %4 : vector<16x60xbf16> to vector<8x2x60xbf16>
    %cst = arith.constant dense<0xFF80> : vector<8x60xbf16>
    %6 = vector.multi_reduction <maximumf>, %5, %cst [1] : vector<8x2x60xbf16> to vector<8x60xbf16>
    %cst_4 = arith.constant 0.000000e+00 : bf16
    %7 = vector.broadcast %cst_4 : bf16 to vector<3x60xbf16>
    %8 = tpu.concatenate %7, %6, %7 in 0 : vector<3x60xbf16>, vector<8x60xbf16>, vector<3x60xbf16> -> vector<14x60xbf16>
    %cst_5 = arith.constant 0.000000e+00 : f32
    %9 = vector.broadcast %cst_5 : f32 to vector<8x16xf32>
    %10 = vector.extract_strided_slice %8 {offsets = [0, 0], sizes = [8, 60], strides = [1, 1]} : vector<14x60xbf16> to vector<8x60xbf16>
    %c0_6 = arith.constant 0 : index
    %c0_7 = arith.constant 0 : index
    %c0_8 = arith.constant 0 : index
    %11 = vector.load %arg2[%c0_6, %c0_7, %c0_8] : memref<7x60x16xbf16, #tpu.memory_space<vmem>>, vector<1x60x16xbf16>
    %12 = vector.shape_cast %11 : vector<1x60x16xbf16> to vector<60x16xbf16>
    %cst_9 = arith.constant dense<0.000000e+00> : vector<8x16xf32>
    %13 = tpu.matmul %10, %12, %cst_9 {dimension_numbers = #tpu.dot_dimension_numbers<[1], [0], [0], [1], [0, 0, 1, 1], [], []>} : vector<8x60xbf16>, vector<60x16xbf16>, vector<8x16xf32> -> vector<8x16xf32>
    %14 = arith.addf %9, %13 : vector<8x16xf32>
    %15 = vector.extract_strided_slice %8 {offsets = [1, 0], sizes = [8, 60], strides = [1, 1]} : vector<14x60xbf16> to vector<8x60xbf16>
    %c1 = arith.constant 1 : index
    %c0_10 = arith.constant 0 : index
    %c0_11 = arith.constant 0 : index
    %16 = vector.load %arg2[%c1, %c0_10, %c0_11] : memref<7x60x16xbf16, #tpu.memory_space<vmem>>, vector<1x60x16xbf16>
    %17 = vector.shape_cast %16 : vector<1x60x16xbf16> to vector<60x16xbf16>
    %cst_12 = arith.constant dense<0.000000e+00> : vector<8x16xf32>
    %18 = tpu.matmul %15, %17, %cst_12 {dimension_numbers = #tpu.dot_dimension_numbers<[1], [0], [0], [1], [0, 0, 1, 1], [], []>} : vector<8x60xbf16>, vector<60x16xbf16>, vector<8x16xf32> -> vector<8x16xf32>
    %19 = arith.addf %14, %18 : vector<8x16xf32>
    %20 = vector.extract_strided_slice %8 {offsets = [2, 0], sizes = [8, 60], strides = [1, 1]} : vector<14x60xbf16> to vector<8x60xbf16>
    %c2 = arith.constant 2 : index
    %c0_13 = arith.constant 0 : index
    %c0_14 = arith.constant 0 : index
    %21 = vector.load %arg2[%c2, %c0_13, %c0_14] : memref<7x60x16xbf16, #tpu.memory_space<vmem>>, vector<1x60x16xbf16>
    %22 = vector.shape_cast %21 : vector<1x60x16xbf16> to vector<60x16xbf16>
    %cst_15 = arith.constant dense<0.000000e+00> : vector<8x16xf32>
    %23 = tpu.matmul %20, %22, %cst_15 {dimension_numbers = #tpu.dot_dimension_numbers<[1], [0], [0], [1], [0, 0, 1, 1], [], []>} : vector<8x60xbf16>, vector<60x16xbf16>, vector<8x16xf32> -> vector<8x16xf32>
    %24 = arith.addf %19, %23 : vector<8x16xf32>
    %25 = vector.extract_strided_slice %8 {offsets = [3, 0], sizes = [8, 60], strides = [1, 1]} : vector<14x60xbf16> to vector<8x60xbf16>
    %c3 = arith.constant 3 : index
    %c0_16 = arith.constant 0 : index
    %c0_17 = arith.constant 0 : index
    %26 = vector.load %arg2[%c3, %c0_16, %c0_17] : memref<7x60x16xbf16, #tpu.memory_space<vmem>>, vector<1x60x16xbf16>
    %27 = vector.shape_cast %26 : vector<1x60x16xbf16> to vector<60x16xbf16>
    %cst_18 = arith.constant dense<0.000000e+00> : vector<8x16xf32>
    %28 = tpu.matmul %25, %27, %cst_18 {dimension_numbers = #tpu.dot_dimension_numbers<[1], [0], [0], [1], [0, 0, 1, 1], [], []>} : vector<8x60xbf16>, vector<60x16xbf16>, vector<8x16xf32> -> vector<8x16xf32>
    %29 = arith.addf %24, %28 : vector<8x16xf32>
    %30 = vector.extract_strided_slice %8 {offsets = [4, 0], sizes = [8, 60], strides = [1, 1]} : vector<14x60xbf16> to vector<8x60xbf16>
    %c4_19 = arith.constant 4 : index
    %c0_20 = arith.constant 0 : index
    %c0_21 = arith.constant 0 : index
    %31 = vector.load %arg2[%c4_19, %c0_20, %c0_21] : memref<7x60x16xbf16, #tpu.memory_space<vmem>>, vector<1x60x16xbf16>
    %32 = vector.shape_cast %31 : vector<1x60x16xbf16> to vector<60x16xbf16>
    %cst_22 = arith.constant dense<0.000000e+00> : vector<8x16xf32>
    %33 = tpu.matmul %30, %32, %cst_22 {dimension_numbers = #tpu.dot_dimension_numbers<[1], [0], [0], [1], [0, 0, 1, 1], [], []>} : vector<8x60xbf16>, vector<60x16xbf16>, vector<8x16xf32> -> vector<8x16xf32>
    %34 = arith.addf %29, %33 : vector<8x16xf32>
    %35 = vector.extract_strided_slice %8 {offsets = [5, 0], sizes = [8, 60], strides = [1, 1]} : vector<14x60xbf16> to vector<8x60xbf16>
    %c5 = arith.constant 5 : index
    %c0_23 = arith.constant 0 : index
    %c0_24 = arith.constant 0 : index
    %36 = vector.load %arg2[%c5, %c0_23, %c0_24] : memref<7x60x16xbf16, #tpu.memory_space<vmem>>, vector<1x60x16xbf16>
    %37 = vector.shape_cast %36 : vector<1x60x16xbf16> to vector<60x16xbf16>
    %cst_25 = arith.constant dense<0.000000e+00> : vector<8x16xf32>
    %38 = tpu.matmul %35, %37, %cst_25 {dimension_numbers = #tpu.dot_dimension_numbers<[1], [0], [0], [1], [0, 0, 1, 1], [], []>} : vector<8x60xbf16>, vector<60x16xbf16>, vector<8x16xf32> -> vector<8x16xf32>
    %39 = arith.addf %34, %38 : vector<8x16xf32>
    %40 = vector.extract_strided_slice %8 {offsets = [6, 0], sizes = [8, 60], strides = [1, 1]} : vector<14x60xbf16> to vector<8x60xbf16>
    %c6 = arith.constant 6 : index
    %c0_26 = arith.constant 0 : index
    %c0_27 = arith.constant 0 : index
    %41 = vector.load %arg2[%c6, %c0_26, %c0_27] : memref<7x60x16xbf16, #tpu.memory_space<vmem>>, vector<1x60x16xbf16>
    %42 = vector.shape_cast %41 : vector<1x60x16xbf16> to vector<60x16xbf16>
    %cst_28 = arith.constant dense<0.000000e+00> : vector<8x16xf32>
    %43 = tpu.matmul %40, %42, %cst_28 {dimension_numbers = #tpu.dot_dimension_numbers<[1], [0], [0], [1], [0, 0, 1, 1], [], []>} : vector<8x60xbf16>, vector<60x16xbf16>, vector<8x16xf32> -> vector<8x16xf32>
    %44 = arith.addf %39, %43 : vector<8x16xf32>
    %c0_29 = arith.constant 0 : index
    %c0_30 = arith.constant 0 : index
    %45 = vector.load %arg3[%c0_29, %c0_30] : memref<2x16xf32, #tpu.memory_space<vmem>>, vector<1x16xf32>
    %46 = vector.broadcast %45 : vector<1x16xf32> to vector<8x16xf32>
    %47 = arith.mulf %44, %46 : vector<8x16xf32>
    %c1_31 = arith.constant 1 : index
    %c0_32 = arith.constant 0 : index
    %48 = vector.load %arg3[%c1_31, %c0_32] : memref<2x16xf32, #tpu.memory_space<vmem>>, vector<1x16xf32>
    %49 = vector.broadcast %48 : vector<1x16xf32> to vector<8x16xf32>
    %50 = arith.addf %47, %49 : vector<8x16xf32>
    %cst_33 = arith.constant 0.000000e+00 : f32
    %51 = vector.broadcast %cst_33 : f32 to vector<8x16xf32>
    %52 = arith.maximumf %50, %51 : vector<8x16xf32>
    %53 = arith.truncf %52 : vector<8x16xf32> to vector<8x16xbf16>
    %c0_34 = arith.constant 0 : index
    %c0_35 = arith.constant 0 : index
    %c0_36 = arith.constant 0 : index
    %54 = vector.load %arg4[%c0_34, %c0_35, %c0_36] : memref<1x8x16xbf16, #tpu.memory_space<vmem>>, vector<1x8x16xbf16>
    %55 = vector.shape_cast %54 : vector<1x8x16xbf16> to vector<8x16xbf16>
    %56 = vector.shape_cast %53 : vector<8x16xbf16> to vector<1x8x16xbf16>
    tpu.vector_store %arg4[%c0_34, %c0_35, %c0_36], %56 {strides = array<i32>} : memref<1x8x16xbf16, #tpu.memory_space<vmem>>, vector<1x8x16xbf16>,
    return
  }
  func.func @transform_0(%arg0: i32) -> (i32, i32, i32) {
    %c0_i32 = arith.constant 0 : i32
    %c0_i32_0 = arith.constant 0 : i32
    %c0_i32_1 = arith.constant 0 : i32
    return %arg0, %c0_i32, %c0_i32_0 : i32, i32, i32
  }
  func.func @transform_1(%arg0: i32) -> (i32, i32, i32) {
    %c0_i32 = arith.constant 0 : i32
    %c0_i32_0 = arith.constant 0 : i32
    %c0_i32_1 = arith.constant 0 : i32
    %c0_i32_2 = arith.constant 0 : i32
    return %c0_i32, %c0_i32_0, %c0_i32_1 : i32, i32, i32
  }
  func.func @transform_2(%arg0: i32) -> (i32, i32) {
    %c0_i32 = arith.constant 0 : i32
    %c0_i32_0 = arith.constant 0 : i32
    %c0_i32_1 = arith.constant 0 : i32
    return %c0_i32, %c0_i32_0 : i32, i32
  }
  func.func @transform_3(%arg0: i32) -> (i32, i32, i32) {
    %c0_i32 = arith.constant 0 : i32
    %c0_i32_0 = arith.constant 0 : i32
    %c0_i32_1 = arith.constant 0 : i32
    return %arg0, %c0_i32, %c0_i32_0 : i32, i32, i32
  }
}

module attributes {stable_mosaic.version = 11 : i64} {
  func.func @kernel(%arg0: i32, %arg1: memref<1x8x16xbf16, #tpu.memory_space<vmem>>, %arg2: memref<5x14x8xbf16, #tpu.memory_space<vmem>>, %arg3: memref<2x8xf32, #tpu.memory_space<vmem>>, %arg4: memref<1x4x8xbf16, #tpu.memory_space<vmem>>) attributes {dimension_semantics = [#tpu.dimension_semantics<parallel>], iteration_bounds = array<i64: 2>, scalar_prefetch = 0 : i64, scratch_operands = 0 : i64, tpu.core_type = #tpu.core_type<tc>, window_params = [{transform_indices = @transform_0, window_bounds = array<i64: 1, 8, 16>}, {pipeline_mode = #tpu.pipeline_mode<synchronous>, transform_indices = @transform_1, window_bounds = array<i64: 5, 14, 8>}, {pipeline_mode = #tpu.pipeline_mode<synchronous>, transform_indices = @transform_2, window_bounds = array<i64: 2, 8>}, {transform_indices = @transform_3, window_bounds = array<i64: 1, 4, 8>}]} {
    %c0 = arith.constant 0 : index
    %c0_0 = arith.constant 0 : index
    %c0_1 = arith.constant 0 : index
    %0 = vector.load %arg1[%c0, %c0_0, %c0_1] : memref<1x8x16xbf16, #tpu.memory_space<vmem>>, vector<1x8x14xbf16>
    %1 = vector.shape_cast %0 : vector<1x8x14xbf16> to vector<8x14xbf16>
    %c0_2 = arith.constant 0 : index
    %c0_3 = arith.constant 0 : index
    %c2 = arith.constant 2 : index
    %2 = vector.load %arg1[%c0_2, %c0_3, %c2] : memref<1x8x16xbf16, #tpu.memory_space<vmem>>, vector<1x8x14xbf16>
    %3 = vector.shape_cast %2 : vector<1x8x14xbf16> to vector<8x14xbf16>
    %4 = arith.maximumf %1, %3 : vector<8x14xbf16>
    %5 = vector.shape_cast %4 : vector<8x14xbf16> to vector<4x2x14xbf16>
    %cst = arith.constant dense<0xFF80> : vector<4x14xbf16>
    %6 = vector.multi_reduction <maximumf>, %5, %cst [1] : vector<4x2x14xbf16> to vector<4x14xbf16>
    %cst_4 = arith.constant 0.000000e+00 : bf16
    %7 = vector.broadcast %cst_4 : bf16 to vector<2x14xbf16>
    %8 = tpu.concatenate %7, %6, %7 in 0 : vector<2x14xbf16>, vector<4x14xbf16>, vector<2x14xbf16> -> vector<8x14xbf16>
    %cst_5 = arith.constant 0.000000e+00 : f32
    %9 = vector.broadcast %cst_5 : f32 to vector<4x8xf32>
    %10 = vector.extract_strided_slice %8 {offsets = [0, 0], sizes = [4, 14], strides = [1, 1]} : vector<8x14xbf16> to vector<4x14xbf16>
    %c0_6 = arith.constant 0 : index
    %c0_7 = arith.constant 0 : index
    %c0_8 = arith.constant 0 : index
    %11 = vector.load %arg2[%c0_6, %c0_7, %c0_8] : memref<5x14x8xbf16, #tpu.memory_space<vmem>>, vector<1x14x8xbf16>
    %12 = vector.shape_cast %11 : vector<1x14x8xbf16> to vector<14x8xbf16>
    %cst_9 = arith.constant dense<0.000000e+00> : vector<4x8xf32>
    %13 = tpu.matmul %10, %12, %cst_9 {dimension_numbers = #tpu.dot_dimension_numbers<[1], [0], [0], [1], [0, 0, 1, 1], [], []>} : vector<4x14xbf16>, vector<14x8xbf16>, vector<4x8xf32> -> vector<4x8xf32>
    %14 = arith.addf %9, %13 : vector<4x8xf32>
    %15 = vector.extract_strided_slice %8 {offsets = [1, 0], sizes = [4, 14], strides = [1, 1]} : vector<8x14xbf16> to vector<4x14xbf16>
    %c1 = arith.constant 1 : index
    %c0_10 = arith.constant 0 : index
    %c0_11 = arith.constant 0 : index
    %16 = vector.load %arg2[%c1, %c0_10, %c0_11] : memref<5x14x8xbf16, #tpu.memory_space<vmem>>, vector<1x14x8xbf16>
    %17 = vector.shape_cast %16 : vector<1x14x8xbf16> to vector<14x8xbf16>
    %cst_12 = arith.constant dense<0.000000e+00> : vector<4x8xf32>
    %18 = tpu.matmul %15, %17, %cst_12 {dimension_numbers = #tpu.dot_dimension_numbers<[1], [0], [0], [1], [0, 0, 1, 1], [], []>} : vector<4x14xbf16>, vector<14x8xbf16>, vector<4x8xf32> -> vector<4x8xf32>
    %19 = arith.addf %14, %18 : vector<4x8xf32>
    %20 = vector.extract_strided_slice %8 {offsets = [2, 0], sizes = [4, 14], strides = [1, 1]} : vector<8x14xbf16> to vector<4x14xbf16>
    %c2_13 = arith.constant 2 : index
    %c0_14 = arith.constant 0 : index
    %c0_15 = arith.constant 0 : index
    %21 = vector.load %arg2[%c2_13, %c0_14, %c0_15] : memref<5x14x8xbf16, #tpu.memory_space<vmem>>, vector<1x14x8xbf16>
    %22 = vector.shape_cast %21 : vector<1x14x8xbf16> to vector<14x8xbf16>
    %cst_16 = arith.constant dense<0.000000e+00> : vector<4x8xf32>
    %23 = tpu.matmul %20, %22, %cst_16 {dimension_numbers = #tpu.dot_dimension_numbers<[1], [0], [0], [1], [0, 0, 1, 1], [], []>} : vector<4x14xbf16>, vector<14x8xbf16>, vector<4x8xf32> -> vector<4x8xf32>
    %24 = arith.addf %19, %23 : vector<4x8xf32>
    %25 = vector.extract_strided_slice %8 {offsets = [3, 0], sizes = [4, 14], strides = [1, 1]} : vector<8x14xbf16> to vector<4x14xbf16>
    %c3 = arith.constant 3 : index
    %c0_17 = arith.constant 0 : index
    %c0_18 = arith.constant 0 : index
    %26 = vector.load %arg2[%c3, %c0_17, %c0_18] : memref<5x14x8xbf16, #tpu.memory_space<vmem>>, vector<1x14x8xbf16>
    %27 = vector.shape_cast %26 : vector<1x14x8xbf16> to vector<14x8xbf16>
    %cst_19 = arith.constant dense<0.000000e+00> : vector<4x8xf32>
    %28 = tpu.matmul %25, %27, %cst_19 {dimension_numbers = #tpu.dot_dimension_numbers<[1], [0], [0], [1], [0, 0, 1, 1], [], []>} : vector<4x14xbf16>, vector<14x8xbf16>, vector<4x8xf32> -> vector<4x8xf32>
    %29 = arith.addf %24, %28 : vector<4x8xf32>
    %30 = vector.extract_strided_slice %8 {offsets = [4, 0], sizes = [4, 14], strides = [1, 1]} : vector<8x14xbf16> to vector<4x14xbf16>
    %c4 = arith.constant 4 : index
    %c0_20 = arith.constant 0 : index
    %c0_21 = arith.constant 0 : index
    %31 = vector.load %arg2[%c4, %c0_20, %c0_21] : memref<5x14x8xbf16, #tpu.memory_space<vmem>>, vector<1x14x8xbf16>
    %32 = vector.shape_cast %31 : vector<1x14x8xbf16> to vector<14x8xbf16>
    %cst_22 = arith.constant dense<0.000000e+00> : vector<4x8xf32>
    %33 = tpu.matmul %30, %32, %cst_22 {dimension_numbers = #tpu.dot_dimension_numbers<[1], [0], [0], [1], [0, 0, 1, 1], [], []>} : vector<4x14xbf16>, vector<14x8xbf16>, vector<4x8xf32> -> vector<4x8xf32>
    %34 = arith.addf %29, %33 : vector<4x8xf32>
    %c0_23 = arith.constant 0 : index
    %c0_24 = arith.constant 0 : index
    %35 = vector.load %arg3[%c0_23, %c0_24] : memref<2x8xf32, #tpu.memory_space<vmem>>, vector<1x8xf32>
    %36 = vector.broadcast %35 : vector<1x8xf32> to vector<4x8xf32>
    %37 = arith.mulf %34, %36 : vector<4x8xf32>
    %c1_25 = arith.constant 1 : index
    %c0_26 = arith.constant 0 : index
    %38 = vector.load %arg3[%c1_25, %c0_26] : memref<2x8xf32, #tpu.memory_space<vmem>>, vector<1x8xf32>
    %39 = vector.broadcast %38 : vector<1x8xf32> to vector<4x8xf32>
    %40 = arith.addf %37, %39 : vector<4x8xf32>
    %cst_27 = arith.constant 0.000000e+00 : f32
    %41 = vector.broadcast %cst_27 : f32 to vector<4x8xf32>
    %42 = arith.maximumf %40, %41 : vector<4x8xf32>
    %43 = arith.truncf %42 : vector<4x8xf32> to vector<4x8xbf16>
    %c0_28 = arith.constant 0 : index
    %c0_29 = arith.constant 0 : index
    %c0_30 = arith.constant 0 : index
    %44 = vector.load %arg4[%c0_28, %c0_29, %c0_30] : memref<1x4x8xbf16, #tpu.memory_space<vmem>>, vector<1x4x8xbf16>
    %45 = vector.shape_cast %44 : vector<1x4x8xbf16> to vector<4x8xbf16>
    %46 = vector.shape_cast %43 : vector<4x8xbf16> to vector<1x4x8xbf16>
    tpu.vector_store %arg4[%c0_28, %c0_29, %c0_30], %46 {strides = array<i32>} : memref<1x4x8xbf16, #tpu.memory_space<vmem>>, vector<1x4x8xbf16>,
    return
  }
  func.func @transform_0(%arg0: i32) -> (i32, i32, i32) {
    %c0_i32 = arith.constant 0 : i32
    %c0_i32_0 = arith.constant 0 : i32
    %c0_i32_1 = arith.constant 0 : i32
    return %arg0, %c0_i32, %c0_i32_0 : i32, i32, i32
  }
  func.func @transform_1(%arg0: i32) -> (i32, i32, i32) {
    %c0_i32 = arith.constant 0 : i32
    %c0_i32_0 = arith.constant 0 : i32
    %c0_i32_1 = arith.constant 0 : i32
    %c0_i32_2 = arith.constant 0 : i32
    return %c0_i32, %c0_i32_0, %c0_i32_1 : i32, i32, i32
  }
  func.func @transform_2(%arg0: i32) -> (i32, i32) {
    %c0_i32 = arith.constant 0 : i32
    %c0_i32_0 = arith.constant 0 : i32
    %c0_i32_1 = arith.constant 0 : i32
    return %c0_i32, %c0_i32_0 : i32, i32
  }
  func.func @transform_3(%arg0: i32) -> (i32, i32, i32) {
    %c0_i32 = arith.constant 0 : i32
    %c0_i32_0 = arith.constant 0 : i32
    %c0_i32_1 = arith.constant 0 : i32
    return %arg0, %c0_i32, %c0_i32_0 : i32, i32, i32
  }
}

module attributes {stable_mosaic.version = 11 : i64} {
  func.func @kernel(%arg0: i32, %arg1: memref<1x4x8xbf16, #tpu.memory_space<vmem>>, %arg2: memref<3x6x4xbf16, #tpu.memory_space<vmem>>, %arg3: memref<2x4xf32, #tpu.memory_space<vmem>>, %arg4: memref<1x2x4xbf16, #tpu.memory_space<vmem>>) attributes {dimension_semantics = [#tpu.dimension_semantics<parallel>], iteration_bounds = array<i64: 2>, scalar_prefetch = 0 : i64, scratch_operands = 0 : i64, tpu.core_type = #tpu.core_type<tc>, window_params = [{transform_indices = @transform_0, window_bounds = array<i64: 1, 4, 8>}, {pipeline_mode = #tpu.pipeline_mode<synchronous>, transform_indices = @transform_1, window_bounds = array<i64: 3, 6, 4>}, {pipeline_mode = #tpu.pipeline_mode<synchronous>, transform_indices = @transform_2, window_bounds = array<i64: 2, 4>}, {transform_indices = @transform_3, window_bounds = array<i64: 1, 2, 4>}]} {
    %c0 = arith.constant 0 : index
    %c0_0 = arith.constant 0 : index
    %c0_1 = arith.constant 0 : index
    %0 = vector.load %arg1[%c0, %c0_0, %c0_1] : memref<1x4x8xbf16, #tpu.memory_space<vmem>>, vector<1x4x6xbf16>
    %1 = vector.shape_cast %0 : vector<1x4x6xbf16> to vector<4x6xbf16>
    %c0_2 = arith.constant 0 : index
    %c0_3 = arith.constant 0 : index
    %c2 = arith.constant 2 : index
    %2 = vector.load %arg1[%c0_2, %c0_3, %c2] : memref<1x4x8xbf16, #tpu.memory_space<vmem>>, vector<1x4x6xbf16>
    %3 = vector.shape_cast %2 : vector<1x4x6xbf16> to vector<4x6xbf16>
    %4 = arith.maximumf %1, %3 : vector<4x6xbf16>
    %5 = vector.shape_cast %4 : vector<4x6xbf16> to vector<2x2x6xbf16>
    %cst = arith.constant dense<0xFF80> : vector<2x6xbf16>
    %6 = vector.multi_reduction <maximumf>, %5, %cst [1] : vector<2x2x6xbf16> to vector<2x6xbf16>
    %cst_4 = arith.constant 0.000000e+00 : bf16
    %7 = vector.broadcast %cst_4 : bf16 to vector<1x6xbf16>
    %8 = tpu.concatenate %7, %6, %7 in 0 : vector<1x6xbf16>, vector<2x6xbf16>, vector<1x6xbf16> -> vector<4x6xbf16>
    %cst_5 = arith.constant 0.000000e+00 : f32
    %9 = vector.broadcast %cst_5 : f32 to vector<2x4xf32>
    %10 = vector.extract_strided_slice %8 {offsets = [0, 0], sizes = [2, 6], strides = [1, 1]} : vector<4x6xbf16> to vector<2x6xbf16>
    %c0_6 = arith.constant 0 : index
    %c0_7 = arith.constant 0 : index
    %c0_8 = arith.constant 0 : index
    %11 = vector.load %arg2[%c0_6, %c0_7, %c0_8] : memref<3x6x4xbf16, #tpu.memory_space<vmem>>, vector<1x6x4xbf16>
    %12 = vector.shape_cast %11 : vector<1x6x4xbf16> to vector<6x4xbf16>
    %cst_9 = arith.constant dense<0.000000e+00> : vector<2x4xf32>
    %13 = tpu.matmul %10, %12, %cst_9 {dimension_numbers = #tpu.dot_dimension_numbers<[1], [0], [0], [1], [0, 0, 1, 1], [], []>} : vector<2x6xbf16>, vector<6x4xbf16>, vector<2x4xf32> -> vector<2x4xf32>
    %14 = arith.addf %9, %13 : vector<2x4xf32>
    %15 = vector.extract_strided_slice %8 {offsets = [1, 0], sizes = [2, 6], strides = [1, 1]} : vector<4x6xbf16> to vector<2x6xbf16>
    %c1 = arith.constant 1 : index
    %c0_10 = arith.constant 0 : index
    %c0_11 = arith.constant 0 : index
    %16 = vector.load %arg2[%c1, %c0_10, %c0_11] : memref<3x6x4xbf16, #tpu.memory_space<vmem>>, vector<1x6x4xbf16>
    %17 = vector.shape_cast %16 : vector<1x6x4xbf16> to vector<6x4xbf16>
    %cst_12 = arith.constant dense<0.000000e+00> : vector<2x4xf32>
    %18 = tpu.matmul %15, %17, %cst_12 {dimension_numbers = #tpu.dot_dimension_numbers<[1], [0], [0], [1], [0, 0, 1, 1], [], []>} : vector<2x6xbf16>, vector<6x4xbf16>, vector<2x4xf32> -> vector<2x4xf32>
    %19 = arith.addf %14, %18 : vector<2x4xf32>
    %20 = vector.extract_strided_slice %8 {offsets = [2, 0], sizes = [2, 6], strides = [1, 1]} : vector<4x6xbf16> to vector<2x6xbf16>
    %c2_13 = arith.constant 2 : index
    %c0_14 = arith.constant 0 : index
    %c0_15 = arith.constant 0 : index
    %21 = vector.load %arg2[%c2_13, %c0_14, %c0_15] : memref<3x6x4xbf16, #tpu.memory_space<vmem>>, vector<1x6x4xbf16>
    %22 = vector.shape_cast %21 : vector<1x6x4xbf16> to vector<6x4xbf16>
    %cst_16 = arith.constant dense<0.000000e+00> : vector<2x4xf32>
    %23 = tpu.matmul %20, %22, %cst_16 {dimension_numbers = #tpu.dot_dimension_numbers<[1], [0], [0], [1], [0, 0, 1, 1], [], []>} : vector<2x6xbf16>, vector<6x4xbf16>, vector<2x4xf32> -> vector<2x4xf32>
    %24 = arith.addf %19, %23 : vector<2x4xf32>
    %c0_17 = arith.constant 0 : index
    %c0_18 = arith.constant 0 : index
    %25 = vector.load %arg3[%c0_17, %c0_18] : memref<2x4xf32, #tpu.memory_space<vmem>>, vector<1x4xf32>
    %26 = vector.broadcast %25 : vector<1x4xf32> to vector<2x4xf32>
    %27 = arith.mulf %24, %26 : vector<2x4xf32>
    %c1_19 = arith.constant 1 : index
    %c0_20 = arith.constant 0 : index
    %28 = vector.load %arg3[%c1_19, %c0_20] : memref<2x4xf32, #tpu.memory_space<vmem>>, vector<1x4xf32>
    %29 = vector.broadcast %28 : vector<1x4xf32> to vector<2x4xf32>
    %30 = arith.addf %27, %29 : vector<2x4xf32>
    %cst_21 = arith.constant 0.000000e+00 : f32
    %31 = vector.broadcast %cst_21 : f32 to vector<2x4xf32>
    %32 = arith.maximumf %30, %31 : vector<2x4xf32>
    %33 = arith.truncf %32 : vector<2x4xf32> to vector<2x4xbf16>
    %c0_22 = arith.constant 0 : index
    %c0_23 = arith.constant 0 : index
    %c0_24 = arith.constant 0 : index
    %34 = vector.load %arg4[%c0_22, %c0_23, %c0_24] : memref<1x2x4xbf16, #tpu.memory_space<vmem>>, vector<1x2x4xbf16>
    %35 = vector.shape_cast %34 : vector<1x2x4xbf16> to vector<2x4xbf16>
    %36 = vector.shape_cast %33 : vector<2x4xbf16> to vector<1x2x4xbf16>
    tpu.vector_store %arg4[%c0_22, %c0_23, %c0_24], %36 {strides = array<i32>} : memref<1x2x4xbf16, #tpu.memory_space<vmem>>, vector<1x2x4xbf16>,
    return
  }
  func.func @transform_0(%arg0: i32) -> (i32, i32, i32) {
    %c0_i32 = arith.constant 0 : i32
    %c0_i32_0 = arith.constant 0 : i32
    %c0_i32_1 = arith.constant 0 : i32
    return %arg0, %c0_i32, %c0_i32_0 : i32, i32, i32
  }
  func.func @transform_1(%arg0: i32) -> (i32, i32, i32) {
    %c0_i32 = arith.constant 0 : i32
    %c0_i32_0 = arith.constant 0 : i32
    %c0_i32_1 = arith.constant 0 : i32
    %c0_i32_2 = arith.constant 0 : i32
    return %c0_i32, %c0_i32_0, %c0_i32_1 : i32, i32, i32
  }
  func.func @transform_2(%arg0: i32) -> (i32, i32) {
    %c0_i32 = arith.constant 0 : i32
    %c0_i32_0 = arith.constant 0 : i32
    %c0_i32_1 = arith.constant 0 : i32
    return %c0_i32, %c0_i32_0 : i32, i32
  }
  func.func @transform_3(%arg0: i32) -> (i32, i32, i32) {
    %c0_i32 = arith.constant 0 : i32
    %c0_i32_0 = arith.constant 0 : i32
    %c0_i32_1 = arith.constant 0 : i32
    return %arg0, %c0_i32, %c0_i32_0 : i32, i32, i32
  }
}

module attributes {stable_mosaic.version = 11 : i64} {
  func.func @kernel(%arg0: i32, %arg1: memref<1x2x4xbf16, #tpu.memory_space<vmem>>, %arg2: memref<3x4x16xbf16, #tpu.memory_space<vmem>>, %arg3: memref<2x16xf32, #tpu.memory_space<vmem>>, %arg4: memref<16x32xf32, #tpu.memory_space<vmem>>, %arg5: memref<4x2xf32, #tpu.memory_space<vmem>>, %arg6: memref<1x4x32xf32, #tpu.memory_space<vmem>>) attributes {dimension_semantics = [#tpu.dimension_semantics<parallel>], iteration_bounds = array<i64: 2>, scalar_prefetch = 0 : i64, scratch_operands = 0 : i64, tpu.core_type = #tpu.core_type<tc>, window_params = [{transform_indices = @transform_0, window_bounds = array<i64: 1, 2, 4>}, {pipeline_mode = #tpu.pipeline_mode<synchronous>, transform_indices = @transform_1, window_bounds = array<i64: 3, 4, 16>}, {pipeline_mode = #tpu.pipeline_mode<synchronous>, transform_indices = @transform_2, window_bounds = array<i64: 2, 16>}, {pipeline_mode = #tpu.pipeline_mode<synchronous>, transform_indices = @transform_3, window_bounds = array<i64: 16, 32>}, {pipeline_mode = #tpu.pipeline_mode<synchronous>, transform_indices = @transform_4, window_bounds = array<i64: 4, 2>}, {transform_indices = @transform_5, window_bounds = array<i64: 1, 4, 32>}]} {
    %c0 = arith.constant 0 : index
    %c0_0 = arith.constant 0 : index
    %c0_1 = arith.constant 0 : index
    %0 = vector.load %arg1[%c0, %c0_0, %c0_1] : memref<1x2x4xbf16, #tpu.memory_space<vmem>>, vector<1x2x4xbf16>
    %1 = vector.shape_cast %0 : vector<1x2x4xbf16> to vector<2x4xbf16>
    %cst = arith.constant 0.000000e+00 : bf16
    %2 = vector.broadcast %cst : bf16 to vector<1x4xbf16>
    %3 = tpu.concatenate %2, %1, %2 in 0 : vector<1x4xbf16>, vector<2x4xbf16>, vector<1x4xbf16> -> vector<4x4xbf16>
    %cst_2 = arith.constant 0.000000e+00 : f32
    %4 = vector.broadcast %cst_2 : f32 to vector<2x16xf32>
    %5 = vector.extract_strided_slice %3 {offsets = [0, 0], sizes = [2, 4], strides = [1, 1]} : vector<4x4xbf16> to vector<2x4xbf16>
    %c0_3 = arith.constant 0 : index
    %c0_4 = arith.constant 0 : index
    %c0_5 = arith.constant 0 : index
    %6 = vector.load %arg2[%c0_3, %c0_4, %c0_5] : memref<3x4x16xbf16, #tpu.memory_space<vmem>>, vector<1x4x16xbf16>
    %7 = vector.shape_cast %6 : vector<1x4x16xbf16> to vector<4x16xbf16>
    %cst_6 = arith.constant dense<0.000000e+00> : vector<2x16xf32>
    %8 = tpu.matmul %5, %7, %cst_6 {dimension_numbers = #tpu.dot_dimension_numbers<[1], [0], [0], [1], [0, 0, 1, 1], [], []>} : vector<2x4xbf16>, vector<4x16xbf16>, vector<2x16xf32> -> vector<2x16xf32>
    %9 = arith.addf %4, %8 : vector<2x16xf32>
    %10 = vector.extract_strided_slice %3 {offsets = [1, 0], sizes = [2, 4], strides = [1, 1]} : vector<4x4xbf16> to vector<2x4xbf16>
    %c1 = arith.constant 1 : index
    %c0_7 = arith.constant 0 : index
    %c0_8 = arith.constant 0 : index
    %11 = vector.load %arg2[%c1, %c0_7, %c0_8] : memref<3x4x16xbf16, #tpu.memory_space<vmem>>, vector<1x4x16xbf16>
    %12 = vector.shape_cast %11 : vector<1x4x16xbf16> to vector<4x16xbf16>
    %cst_9 = arith.constant dense<0.000000e+00> : vector<2x16xf32>
    %13 = tpu.matmul %10, %12, %cst_9 {dimension_numbers = #tpu.dot_dimension_numbers<[1], [0], [0], [1], [0, 0, 1, 1], [], []>} : vector<2x4xbf16>, vector<4x16xbf16>, vector<2x16xf32> -> vector<2x16xf32>
    %14 = arith.addf %9, %13 : vector<2x16xf32>
    %15 = vector.extract_strided_slice %3 {offsets = [2, 0], sizes = [2, 4], strides = [1, 1]} : vector<4x4xbf16> to vector<2x4xbf16>
    %c2 = arith.constant 2 : index
    %c0_10 = arith.constant 0 : index
    %c0_11 = arith.constant 0 : index
    %16 = vector.load %arg2[%c2, %c0_10, %c0_11] : memref<3x4x16xbf16, #tpu.memory_space<vmem>>, vector<1x4x16xbf16>
    %17 = vector.shape_cast %16 : vector<1x4x16xbf16> to vector<4x16xbf16>
    %cst_12 = arith.constant dense<0.000000e+00> : vector<2x16xf32>
    %18 = tpu.matmul %15, %17, %cst_12 {dimension_numbers = #tpu.dot_dimension_numbers<[1], [0], [0], [1], [0, 0, 1, 1], [], []>} : vector<2x4xbf16>, vector<4x16xbf16>, vector<2x16xf32> -> vector<2x16xf32>
    %19 = arith.addf %14, %18 : vector<2x16xf32>
    %c0_13 = arith.constant 0 : index
    %c0_14 = arith.constant 0 : index
    %20 = vector.load %arg3[%c0_13, %c0_14] : memref<2x16xf32, #tpu.memory_space<vmem>>, vector<1x16xf32>
    %21 = vector.broadcast %20 : vector<1x16xf32> to vector<2x16xf32>
    %22 = arith.mulf %19, %21 : vector<2x16xf32>
    %c1_15 = arith.constant 1 : index
    %c0_16 = arith.constant 0 : index
    %23 = vector.load %arg3[%c1_15, %c0_16] : memref<2x16xf32, #tpu.memory_space<vmem>>, vector<1x16xf32>
    %24 = vector.broadcast %23 : vector<1x16xf32> to vector<2x16xf32>
    %25 = arith.addf %22, %24 : vector<2x16xf32>
    %cst_17 = arith.constant 0.000000e+00 : f32
    %26 = vector.broadcast %cst_17 : f32 to vector<2x16xf32>
    %27 = arith.maximumf %25, %26 : vector<2x16xf32>
    %c0_18 = arith.constant 0 : index
    %c0_19 = arith.constant 0 : index
    %28 = vector.load %arg4[%c0_18, %c0_19] : memref<16x32xf32, #tpu.memory_space<vmem>>, vector<16x32xf32>
    %cst_20 = arith.constant dense<0.000000e+00> : vector<2x32xf32>
    %29 = tpu.matmul %27, %28, %cst_20 {dimension_numbers = #tpu.dot_dimension_numbers<[1], [0], [0], [1], [0, 0, 1, 1], [], []>} : vector<2x16xf32>, vector<16x32xf32>, vector<2x32xf32> -> vector<2x32xf32>
    %c0_21 = arith.constant 0 : index
    %c0_22 = arith.constant 0 : index
    %30 = vector.load %arg5[%c0_21, %c0_22] : memref<4x2xf32, #tpu.memory_space<vmem>>, vector<4x2xf32>
    %cst_23 = arith.constant dense<0.000000e+00> : vector<4x32xf32>
    %31 = tpu.matmul %30, %29, %cst_23 {dimension_numbers = #tpu.dot_dimension_numbers<[1], [0], [0], [1], [0, 0, 1, 1], [], []>} : vector<4x2xf32>, vector<2x32xf32>, vector<4x32xf32> -> vector<4x32xf32>
    %c0_24 = arith.constant 0 : index
    %c0_25 = arith.constant 0 : index
    %c0_26 = arith.constant 0 : index
    %32 = vector.load %arg6[%c0_24, %c0_25, %c0_26] : memref<1x4x32xf32, #tpu.memory_space<vmem>>, vector<1x4x32xf32>
    %33 = vector.shape_cast %32 : vector<1x4x32xf32> to vector<4x32xf32>
    %34 = vector.shape_cast %31 : vector<4x32xf32> to vector<1x4x32xf32>
    tpu.vector_store %arg6[%c0_24, %c0_25, %c0_26], %34 {strides = array<i32>} : memref<1x4x32xf32, #tpu.memory_space<vmem>>, vector<1x4x32xf32>,
    return
  }
  func.func @transform_0(%arg0: i32) -> (i32, i32, i32) {
    %c0_i32 = arith.constant 0 : i32
    %c0_i32_0 = arith.constant 0 : i32
    %c0_i32_1 = arith.constant 0 : i32
    return %arg0, %c0_i32, %c0_i32_0 : i32, i32, i32
  }
  func.func @transform_1(%arg0: i32) -> (i32, i32, i32) {
    %c0_i32 = arith.constant 0 : i32
    %c0_i32_0 = arith.constant 0 : i32
    %c0_i32_1 = arith.constant 0 : i32
    %c0_i32_2 = arith.constant 0 : i32
    return %c0_i32, %c0_i32_0, %c0_i32_1 : i32, i32, i32
  }
  func.func @transform_2(%arg0: i32) -> (i32, i32) {
    %c0_i32 = arith.constant 0 : i32
    %c0_i32_0 = arith.constant 0 : i32
    %c0_i32_1 = arith.constant 0 : i32
    return %c0_i32, %c0_i32_0 : i32, i32
  }
  func.func @transform_3(%arg0: i32) -> (i32, i32) {
    %c0_i32 = arith.constant 0 : i32
    %c0_i32_0 = arith.constant 0 : i32
    %c0_i32_1 = arith.constant 0 : i32
    return %c0_i32, %c0_i32_0 : i32, i32
  }
  func.func @transform_4(%arg0: i32) -> (i32, i32) {
    %c0_i32 = arith.constant 0 : i32
    %c0_i32_0 = arith.constant 0 : i32
    %c0_i32_1 = arith.constant 0 : i32
    return %c0_i32, %c0_i32_0 : i32, i32
  }
  func.func @transform_5(%arg0: i32) -> (i32, i32, i32) {
    %c0_i32 = arith.constant 0 : i32
    %c0_i32_0 = arith.constant 0 : i32
    %c0_i32_1 = arith.constant 0 : i32
    return %arg0, %c0_i32, %c0_i32_0 : i32, i32, i32
  }
}

module attributes {stable_mosaic.version = 11 : i64} {
  func.func @kernel(%arg0: i32, %arg1: memref<1x4x8xbf16, #tpu.memory_space<vmem>>, %arg2: memref<5x8x32xbf16, #tpu.memory_space<vmem>>, %arg3: memref<2x32xf32, #tpu.memory_space<vmem>>, %arg4: memref<32x64xf32, #tpu.memory_space<vmem>>, %arg5: memref<8x4xf32, #tpu.memory_space<vmem>>, %arg6: memref<1x4x32xf32, #tpu.memory_space<vmem>>, %arg7: memref<1x8x64xf32, #tpu.memory_space<vmem>>) attributes {dimension_semantics = [#tpu.dimension_semantics<parallel>], iteration_bounds = array<i64: 2>, scalar_prefetch = 0 : i64, scratch_operands = 0 : i64, tpu.core_type = #tpu.core_type<tc>, window_params = [{transform_indices = @transform_0, window_bounds = array<i64: 1, 4, 8>}, {pipeline_mode = #tpu.pipeline_mode<synchronous>, transform_indices = @transform_1, window_bounds = array<i64: 5, 8, 32>}, {pipeline_mode = #tpu.pipeline_mode<synchronous>, transform_indices = @transform_2, window_bounds = array<i64: 2, 32>}, {pipeline_mode = #tpu.pipeline_mode<synchronous>, transform_indices = @transform_3, window_bounds = array<i64: 32, 64>}, {pipeline_mode = #tpu.pipeline_mode<synchronous>, transform_indices = @transform_4, window_bounds = array<i64: 8, 4>}, {transform_indices = @transform_5, window_bounds = array<i64: 1, 4, 32>}, {transform_indices = @transform_6, window_bounds = array<i64: 1, 8, 64>}]} {
    %c0 = arith.constant 0 : index
    %c0_0 = arith.constant 0 : index
    %c0_1 = arith.constant 0 : index
    %0 = vector.load %arg1[%c0, %c0_0, %c0_1] : memref<1x4x8xbf16, #tpu.memory_space<vmem>>, vector<1x4x8xbf16>
    %1 = vector.shape_cast %0 : vector<1x4x8xbf16> to vector<4x8xbf16>
    %cst = arith.constant 0.000000e+00 : bf16
    %2 = vector.broadcast %cst : bf16 to vector<2x8xbf16>
    %3 = tpu.concatenate %2, %1, %2 in 0 : vector<2x8xbf16>, vector<4x8xbf16>, vector<2x8xbf16> -> vector<8x8xbf16>
    %cst_2 = arith.constant 0.000000e+00 : f32
    %4 = vector.broadcast %cst_2 : f32 to vector<4x32xf32>
    %5 = vector.extract_strided_slice %3 {offsets = [0, 0], sizes = [4, 8], strides = [1, 1]} : vector<8x8xbf16> to vector<4x8xbf16>
    %c0_3 = arith.constant 0 : index
    %c0_4 = arith.constant 0 : index
    %c0_5 = arith.constant 0 : index
    %6 = vector.load %arg2[%c0_3, %c0_4, %c0_5] : memref<5x8x32xbf16, #tpu.memory_space<vmem>>, vector<1x8x32xbf16>
    %7 = vector.shape_cast %6 : vector<1x8x32xbf16> to vector<8x32xbf16>
    %cst_6 = arith.constant dense<0.000000e+00> : vector<4x32xf32>
    %8 = tpu.matmul %5, %7, %cst_6 {dimension_numbers = #tpu.dot_dimension_numbers<[1], [0], [0], [1], [0, 0, 1, 1], [], []>} : vector<4x8xbf16>, vector<8x32xbf16>, vector<4x32xf32> -> vector<4x32xf32>
    %9 = arith.addf %4, %8 : vector<4x32xf32>
    %10 = vector.extract_strided_slice %3 {offsets = [1, 0], sizes = [4, 8], strides = [1, 1]} : vector<8x8xbf16> to vector<4x8xbf16>
    %c1 = arith.constant 1 : index
    %c0_7 = arith.constant 0 : index
    %c0_8 = arith.constant 0 : index
    %11 = vector.load %arg2[%c1, %c0_7, %c0_8] : memref<5x8x32xbf16, #tpu.memory_space<vmem>>, vector<1x8x32xbf16>
    %12 = vector.shape_cast %11 : vector<1x8x32xbf16> to vector<8x32xbf16>
    %cst_9 = arith.constant dense<0.000000e+00> : vector<4x32xf32>
    %13 = tpu.matmul %10, %12, %cst_9 {dimension_numbers = #tpu.dot_dimension_numbers<[1], [0], [0], [1], [0, 0, 1, 1], [], []>} : vector<4x8xbf16>, vector<8x32xbf16>, vector<4x32xf32> -> vector<4x32xf32>
    %14 = arith.addf %9, %13 : vector<4x32xf32>
    %15 = vector.extract_strided_slice %3 {offsets = [2, 0], sizes = [4, 8], strides = [1, 1]} : vector<8x8xbf16> to vector<4x8xbf16>
    %c2 = arith.constant 2 : index
    %c0_10 = arith.constant 0 : index
    %c0_11 = arith.constant 0 : index
    %16 = vector.load %arg2[%c2, %c0_10, %c0_11] : memref<5x8x32xbf16, #tpu.memory_space<vmem>>, vector<1x8x32xbf16>
    %17 = vector.shape_cast %16 : vector<1x8x32xbf16> to vector<8x32xbf16>
    %cst_12 = arith.constant dense<0.000000e+00> : vector<4x32xf32>
    %18 = tpu.matmul %15, %17, %cst_12 {dimension_numbers = #tpu.dot_dimension_numbers<[1], [0], [0], [1], [0, 0, 1, 1], [], []>} : vector<4x8xbf16>, vector<8x32xbf16>, vector<4x32xf32> -> vector<4x32xf32>
    %19 = arith.addf %14, %18 : vector<4x32xf32>
    %20 = vector.extract_strided_slice %3 {offsets = [3, 0], sizes = [4, 8], strides = [1, 1]} : vector<8x8xbf16> to vector<4x8xbf16>
    %c3 = arith.constant 3 : index
    %c0_13 = arith.constant 0 : index
    %c0_14 = arith.constant 0 : index
    %21 = vector.load %arg2[%c3, %c0_13, %c0_14] : memref<5x8x32xbf16, #tpu.memory_space<vmem>>, vector<1x8x32xbf16>
    %22 = vector.shape_cast %21 : vector<1x8x32xbf16> to vector<8x32xbf16>
    %cst_15 = arith.constant dense<0.000000e+00> : vector<4x32xf32>
    %23 = tpu.matmul %20, %22, %cst_15 {dimension_numbers = #tpu.dot_dimension_numbers<[1], [0], [0], [1], [0, 0, 1, 1], [], []>} : vector<4x8xbf16>, vector<8x32xbf16>, vector<4x32xf32> -> vector<4x32xf32>
    %24 = arith.addf %19, %23 : vector<4x32xf32>
    %25 = vector.extract_strided_slice %3 {offsets = [4, 0], sizes = [4, 8], strides = [1, 1]} : vector<8x8xbf16> to vector<4x8xbf16>
    %c4 = arith.constant 4 : index
    %c0_16 = arith.constant 0 : index
    %c0_17 = arith.constant 0 : index
    %26 = vector.load %arg2[%c4, %c0_16, %c0_17] : memref<5x8x32xbf16, #tpu.memory_space<vmem>>, vector<1x8x32xbf16>
    %27 = vector.shape_cast %26 : vector<1x8x32xbf16> to vector<8x32xbf16>
    %cst_18 = arith.constant dense<0.000000e+00> : vector<4x32xf32>
    %28 = tpu.matmul %25, %27, %cst_18 {dimension_numbers = #tpu.dot_dimension_numbers<[1], [0], [0], [1], [0, 0, 1, 1], [], []>} : vector<4x8xbf16>, vector<8x32xbf16>, vector<4x32xf32> -> vector<4x32xf32>
    %29 = arith.addf %24, %28 : vector<4x32xf32>
    %c0_19 = arith.constant 0 : index
    %c0_20 = arith.constant 0 : index
    %30 = vector.load %arg3[%c0_19, %c0_20] : memref<2x32xf32, #tpu.memory_space<vmem>>, vector<1x32xf32>
    %31 = vector.broadcast %30 : vector<1x32xf32> to vector<4x32xf32>
    %32 = arith.mulf %29, %31 : vector<4x32xf32>
    %c1_21 = arith.constant 1 : index
    %c0_22 = arith.constant 0 : index
    %33 = vector.load %arg3[%c1_21, %c0_22] : memref<2x32xf32, #tpu.memory_space<vmem>>, vector<1x32xf32>
    %34 = vector.broadcast %33 : vector<1x32xf32> to vector<4x32xf32>
    %35 = arith.addf %32, %34 : vector<4x32xf32>
    %cst_23 = arith.constant 0.000000e+00 : f32
    %36 = vector.broadcast %cst_23 : f32 to vector<4x32xf32>
    %37 = arith.maximumf %35, %36 : vector<4x32xf32>
    %c0_24 = arith.constant 0 : index
    %c0_25 = arith.constant 0 : index
    %c0_26 = arith.constant 0 : index
    %38 = vector.load %arg6[%c0_24, %c0_25, %c0_26] : memref<1x4x32xf32, #tpu.memory_space<vmem>>, vector<1x4x32xf32>
    %39 = vector.shape_cast %38 : vector<1x4x32xf32> to vector<4x32xf32>
    %40 = arith.addf %37, %39 : vector<4x32xf32>
    %c0_27 = arith.constant 0 : index
    %c0_28 = arith.constant 0 : index
    %41 = vector.load %arg4[%c0_27, %c0_28] : memref<32x64xf32, #tpu.memory_space<vmem>>, vector<32x64xf32>
    %cst_29 = arith.constant dense<0.000000e+00> : vector<4x64xf32>
    %42 = tpu.matmul %40, %41, %cst_29 {dimension_numbers = #tpu.dot_dimension_numbers<[1], [0], [0], [1], [0, 0, 1, 1], [], []>} : vector<4x32xf32>, vector<32x64xf32>, vector<4x64xf32> -> vector<4x64xf32>
    %c0_30 = arith.constant 0 : index
    %c0_31 = arith.constant 0 : index
    %43 = vector.load %arg5[%c0_30, %c0_31] : memref<8x4xf32, #tpu.memory_space<vmem>>, vector<8x4xf32>
    %cst_32 = arith.constant dense<0.000000e+00> : vector<8x64xf32>
    %44 = tpu.matmul %43, %42, %cst_32 {dimension_numbers = #tpu.dot_dimension_numbers<[1], [0], [0], [1], [0, 0, 1, 1], [], []>} : vector<8x4xf32>, vector<4x64xf32>, vector<8x64xf32> -> vector<8x64xf32>
    %c0_33 = arith.constant 0 : index
    %c0_34 = arith.constant 0 : index
    %c0_35 = arith.constant 0 : index
    %45 = vector.load %arg7[%c0_33, %c0_34, %c0_35] : memref<1x8x64xf32, #tpu.memory_space<vmem>>, vector<1x8x64xf32>
    %46 = vector.shape_cast %45 : vector<1x8x64xf32> to vector<8x64xf32>
    %47 = vector.shape_cast %44 : vector<8x64xf32> to vector<1x8x64xf32>
    tpu.vector_store %arg7[%c0_33, %c0_34, %c0_35], %47 {strides = array<i32>} : memref<1x8x64xf32, #tpu.memory_space<vmem>>, vector<1x8x64xf32>,
    return
  }
  func.func @transform_0(%arg0: i32) -> (i32, i32, i32) {
    %c0_i32 = arith.constant 0 : i32
    %c0_i32_0 = arith.constant 0 : i32
    %c0_i32_1 = arith.constant 0 : i32
    return %arg0, %c0_i32, %c0_i32_0 : i32, i32, i32
  }
  func.func @transform_1(%arg0: i32) -> (i32, i32, i32) {
    %c0_i32 = arith.constant 0 : i32
    %c0_i32_0 = arith.constant 0 : i32
    %c0_i32_1 = arith.constant 0 : i32
    %c0_i32_2 = arith.constant 0 : i32
    return %c0_i32, %c0_i32_0, %c0_i32_1 : i32, i32, i32
  }
  func.func @transform_2(%arg0: i32) -> (i32, i32) {
    %c0_i32 = arith.constant 0 : i32
    %c0_i32_0 = arith.constant 0 : i32
    %c0_i32_1 = arith.constant 0 : i32
    return %c0_i32, %c0_i32_0 : i32, i32
  }
  func.func @transform_3(%arg0: i32) -> (i32, i32) {
    %c0_i32 = arith.constant 0 : i32
    %c0_i32_0 = arith.constant 0 : i32
    %c0_i32_1 = arith.constant 0 : i32
    return %c0_i32, %c0_i32_0 : i32, i32
  }
  func.func @transform_4(%arg0: i32) -> (i32, i32) {
    %c0_i32 = arith.constant 0 : i32
    %c0_i32_0 = arith.constant 0 : i32
    %c0_i32_1 = arith.constant 0 : i32
    return %c0_i32, %c0_i32_0 : i32, i32
  }
  func.func @transform_5(%arg0: i32) -> (i32, i32, i32) {
    %c0_i32 = arith.constant 0 : i32
    %c0_i32_0 = arith.constant 0 : i32
    %c0_i32_1 = arith.constant 0 : i32
    return %arg0, %c0_i32, %c0_i32_0 : i32, i32, i32
  }
  func.func @transform_6(%arg0: i32) -> (i32, i32, i32) {
    %c0_i32 = arith.constant 0 : i32
    %c0_i32_0 = arith.constant 0 : i32
    %c0_i32_1 = arith.constant 0 : i32
    return %arg0, %c0_i32, %c0_i32_0 : i32, i32, i32
  }
}

module attributes {stable_mosaic.version = 11 : i64} {
  func.func @kernel(%arg0: i32, %arg1: memref<1x8x16xbf16, #tpu.memory_space<vmem>>, %arg2: memref<7x16x64xbf16, #tpu.memory_space<vmem>>, %arg3: memref<2x64xf32, #tpu.memory_space<vmem>>, %arg4: memref<64x128xf32, #tpu.memory_space<vmem>>, %arg5: memref<16x8xf32, #tpu.memory_space<vmem>>, %arg6: memref<1x8x64xf32, #tpu.memory_space<vmem>>, %arg7: memref<1x16x128xf32, #tpu.memory_space<vmem>>) attributes {dimension_semantics = [#tpu.dimension_semantics<parallel>], iteration_bounds = array<i64: 2>, scalar_prefetch = 0 : i64, scratch_operands = 0 : i64, tpu.core_type = #tpu.core_type<tc>, window_params = [{transform_indices = @transform_0, window_bounds = array<i64: 1, 8, 16>}, {pipeline_mode = #tpu.pipeline_mode<synchronous>, transform_indices = @transform_1, window_bounds = array<i64: 7, 16, 64>}, {pipeline_mode = #tpu.pipeline_mode<synchronous>, transform_indices = @transform_2, window_bounds = array<i64: 2, 64>}, {pipeline_mode = #tpu.pipeline_mode<synchronous>, transform_indices = @transform_3, window_bounds = array<i64: 64, 128>}, {pipeline_mode = #tpu.pipeline_mode<synchronous>, transform_indices = @transform_4, window_bounds = array<i64: 16, 8>}, {transform_indices = @transform_5, window_bounds = array<i64: 1, 8, 64>}, {transform_indices = @transform_6, window_bounds = array<i64: 1, 16, 128>}]} {
    %c0 = arith.constant 0 : index
    %c0_0 = arith.constant 0 : index
    %c0_1 = arith.constant 0 : index
    %0 = vector.load %arg1[%c0, %c0_0, %c0_1] : memref<1x8x16xbf16, #tpu.memory_space<vmem>>, vector<1x8x16xbf16>
    %1 = vector.shape_cast %0 : vector<1x8x16xbf16> to vector<8x16xbf16>
    %cst = arith.constant 0.000000e+00 : bf16
    %2 = vector.broadcast %cst : bf16 to vector<3x16xbf16>
    %3 = tpu.concatenate %2, %1, %2 in 0 : vector<3x16xbf16>, vector<8x16xbf16>, vector<3x16xbf16> -> vector<14x16xbf16>
    %cst_2 = arith.constant 0.000000e+00 : f32
    %4 = vector.broadcast %cst_2 : f32 to vector<8x64xf32>
    %5 = vector.extract_strided_slice %3 {offsets = [0, 0], sizes = [8, 16], strides = [1, 1]} : vector<14x16xbf16> to vector<8x16xbf16>
    %c0_3 = arith.constant 0 : index
    %c0_4 = arith.constant 0 : index
    %c0_5 = arith.constant 0 : index
    %6 = vector.load %arg2[%c0_3, %c0_4, %c0_5] : memref<7x16x64xbf16, #tpu.memory_space<vmem>>, vector<1x16x64xbf16>
    %7 = vector.shape_cast %6 : vector<1x16x64xbf16> to vector<16x64xbf16>
    %cst_6 = arith.constant dense<0.000000e+00> : vector<8x64xf32>
    %8 = tpu.matmul %5, %7, %cst_6 {dimension_numbers = #tpu.dot_dimension_numbers<[1], [0], [0], [1], [0, 0, 1, 1], [], []>} : vector<8x16xbf16>, vector<16x64xbf16>, vector<8x64xf32> -> vector<8x64xf32>
    %9 = arith.addf %4, %8 : vector<8x64xf32>
    %10 = vector.extract_strided_slice %3 {offsets = [1, 0], sizes = [8, 16], strides = [1, 1]} : vector<14x16xbf16> to vector<8x16xbf16>
    %c1 = arith.constant 1 : index
    %c0_7 = arith.constant 0 : index
    %c0_8 = arith.constant 0 : index
    %11 = vector.load %arg2[%c1, %c0_7, %c0_8] : memref<7x16x64xbf16, #tpu.memory_space<vmem>>, vector<1x16x64xbf16>
    %12 = vector.shape_cast %11 : vector<1x16x64xbf16> to vector<16x64xbf16>
    %cst_9 = arith.constant dense<0.000000e+00> : vector<8x64xf32>
    %13 = tpu.matmul %10, %12, %cst_9 {dimension_numbers = #tpu.dot_dimension_numbers<[1], [0], [0], [1], [0, 0, 1, 1], [], []>} : vector<8x16xbf16>, vector<16x64xbf16>, vector<8x64xf32> -> vector<8x64xf32>
    %14 = arith.addf %9, %13 : vector<8x64xf32>
    %15 = vector.extract_strided_slice %3 {offsets = [2, 0], sizes = [8, 16], strides = [1, 1]} : vector<14x16xbf16> to vector<8x16xbf16>
    %c2 = arith.constant 2 : index
    %c0_10 = arith.constant 0 : index
    %c0_11 = arith.constant 0 : index
    %16 = vector.load %arg2[%c2, %c0_10, %c0_11] : memref<7x16x64xbf16, #tpu.memory_space<vmem>>, vector<1x16x64xbf16>
    %17 = vector.shape_cast %16 : vector<1x16x64xbf16> to vector<16x64xbf16>
    %cst_12 = arith.constant dense<0.000000e+00> : vector<8x64xf32>
    %18 = tpu.matmul %15, %17, %cst_12 {dimension_numbers = #tpu.dot_dimension_numbers<[1], [0], [0], [1], [0, 0, 1, 1], [], []>} : vector<8x16xbf16>, vector<16x64xbf16>, vector<8x64xf32> -> vector<8x64xf32>
    %19 = arith.addf %14, %18 : vector<8x64xf32>
    %20 = vector.extract_strided_slice %3 {offsets = [3, 0], sizes = [8, 16], strides = [1, 1]} : vector<14x16xbf16> to vector<8x16xbf16>
    %c3 = arith.constant 3 : index
    %c0_13 = arith.constant 0 : index
    %c0_14 = arith.constant 0 : index
    %21 = vector.load %arg2[%c3, %c0_13, %c0_14] : memref<7x16x64xbf16, #tpu.memory_space<vmem>>, vector<1x16x64xbf16>
    %22 = vector.shape_cast %21 : vector<1x16x64xbf16> to vector<16x64xbf16>
    %cst_15 = arith.constant dense<0.000000e+00> : vector<8x64xf32>
    %23 = tpu.matmul %20, %22, %cst_15 {dimension_numbers = #tpu.dot_dimension_numbers<[1], [0], [0], [1], [0, 0, 1, 1], [], []>} : vector<8x16xbf16>, vector<16x64xbf16>, vector<8x64xf32> -> vector<8x64xf32>
    %24 = arith.addf %19, %23 : vector<8x64xf32>
    %25 = vector.extract_strided_slice %3 {offsets = [4, 0], sizes = [8, 16], strides = [1, 1]} : vector<14x16xbf16> to vector<8x16xbf16>
    %c4 = arith.constant 4 : index
    %c0_16 = arith.constant 0 : index
    %c0_17 = arith.constant 0 : index
    %26 = vector.load %arg2[%c4, %c0_16, %c0_17] : memref<7x16x64xbf16, #tpu.memory_space<vmem>>, vector<1x16x64xbf16>
    %27 = vector.shape_cast %26 : vector<1x16x64xbf16> to vector<16x64xbf16>
    %cst_18 = arith.constant dense<0.000000e+00> : vector<8x64xf32>
    %28 = tpu.matmul %25, %27, %cst_18 {dimension_numbers = #tpu.dot_dimension_numbers<[1], [0], [0], [1], [0, 0, 1, 1], [], []>} : vector<8x16xbf16>, vector<16x64xbf16>, vector<8x64xf32> -> vector<8x64xf32>
    %29 = arith.addf %24, %28 : vector<8x64xf32>
    %30 = vector.extract_strided_slice %3 {offsets = [5, 0], sizes = [8, 16], strides = [1, 1]} : vector<14x16xbf16> to vector<8x16xbf16>
    %c5 = arith.constant 5 : index
    %c0_19 = arith.constant 0 : index
    %c0_20 = arith.constant 0 : index
    %31 = vector.load %arg2[%c5, %c0_19, %c0_20] : memref<7x16x64xbf16, #tpu.memory_space<vmem>>, vector<1x16x64xbf16>
    %32 = vector.shape_cast %31 : vector<1x16x64xbf16> to vector<16x64xbf16>
    %cst_21 = arith.constant dense<0.000000e+00> : vector<8x64xf32>
    %33 = tpu.matmul %30, %32, %cst_21 {dimension_numbers = #tpu.dot_dimension_numbers<[1], [0], [0], [1], [0, 0, 1, 1], [], []>} : vector<8x16xbf16>, vector<16x64xbf16>, vector<8x64xf32> -> vector<8x64xf32>
    %34 = arith.addf %29, %33 : vector<8x64xf32>
    %35 = vector.extract_strided_slice %3 {offsets = [6, 0], sizes = [8, 16], strides = [1, 1]} : vector<14x16xbf16> to vector<8x16xbf16>
    %c6 = arith.constant 6 : index
    %c0_22 = arith.constant 0 : index
    %c0_23 = arith.constant 0 : index
    %36 = vector.load %arg2[%c6, %c0_22, %c0_23] : memref<7x16x64xbf16, #tpu.memory_space<vmem>>, vector<1x16x64xbf16>
    %37 = vector.shape_cast %36 : vector<1x16x64xbf16> to vector<16x64xbf16>
    %cst_24 = arith.constant dense<0.000000e+00> : vector<8x64xf32>
    %38 = tpu.matmul %35, %37, %cst_24 {dimension_numbers = #tpu.dot_dimension_numbers<[1], [0], [0], [1], [0, 0, 1, 1], [], []>} : vector<8x16xbf16>, vector<16x64xbf16>, vector<8x64xf32> -> vector<8x64xf32>
    %39 = arith.addf %34, %38 : vector<8x64xf32>
    %c0_25 = arith.constant 0 : index
    %c0_26 = arith.constant 0 : index
    %40 = vector.load %arg3[%c0_25, %c0_26] : memref<2x64xf32, #tpu.memory_space<vmem>>, vector<1x64xf32>
    %41 = vector.broadcast %40 : vector<1x64xf32> to vector<8x64xf32>
    %42 = arith.mulf %39, %41 : vector<8x64xf32>
    %c1_27 = arith.constant 1 : index
    %c0_28 = arith.constant 0 : index
    %43 = vector.load %arg3[%c1_27, %c0_28] : memref<2x64xf32, #tpu.memory_space<vmem>>, vector<1x64xf32>
    %44 = vector.broadcast %43 : vector<1x64xf32> to vector<8x64xf32>
    %45 = arith.addf %42, %44 : vector<8x64xf32>
    %cst_29 = arith.constant 0.000000e+00 : f32
    %46 = vector.broadcast %cst_29 : f32 to vector<8x64xf32>
    %47 = arith.maximumf %45, %46 : vector<8x64xf32>
    %c0_30 = arith.constant 0 : index
    %c0_31 = arith.constant 0 : index
    %c0_32 = arith.constant 0 : index
    %48 = vector.load %arg6[%c0_30, %c0_31, %c0_32] : memref<1x8x64xf32, #tpu.memory_space<vmem>>, vector<1x8x64xf32>
    %49 = vector.shape_cast %48 : vector<1x8x64xf32> to vector<8x64xf32>
    %50 = arith.addf %47, %49 : vector<8x64xf32>
    %c0_33 = arith.constant 0 : index
    %c0_34 = arith.constant 0 : index
    %51 = vector.load %arg4[%c0_33, %c0_34] : memref<64x128xf32, #tpu.memory_space<vmem>>, vector<64x128xf32>
    %cst_35 = arith.constant dense<0.000000e+00> : vector<8x128xf32>
    %52 = tpu.matmul %50, %51, %cst_35 {dimension_numbers = #tpu.dot_dimension_numbers<[1], [0], [0], [1], [0, 0, 1, 1], [], []>} : vector<8x64xf32>, vector<64x128xf32>, vector<8x128xf32> -> vector<8x128xf32>
    %c0_36 = arith.constant 0 : index
    %c0_37 = arith.constant 0 : index
    %53 = vector.load %arg5[%c0_36, %c0_37] : memref<16x8xf32, #tpu.memory_space<vmem>>, vector<16x8xf32>
    %cst_38 = arith.constant dense<0.000000e+00> : vector<16x128xf32>
    %54 = tpu.matmul %53, %52, %cst_38 {dimension_numbers = #tpu.dot_dimension_numbers<[1], [0], [0], [1], [0, 0, 1, 1], [], []>} : vector<16x8xf32>, vector<8x128xf32>, vector<16x128xf32> -> vector<16x128xf32>
    %c0_39 = arith.constant 0 : index
    %c0_40 = arith.constant 0 : index
    %c0_41 = arith.constant 0 : index
    %55 = vector.load %arg7[%c0_39, %c0_40, %c0_41] : memref<1x16x128xf32, #tpu.memory_space<vmem>>, vector<1x16x128xf32>
    %56 = vector.shape_cast %55 : vector<1x16x128xf32> to vector<16x128xf32>
    %57 = vector.shape_cast %54 : vector<16x128xf32> to vector<1x16x128xf32>
    tpu.vector_store %arg7[%c0_39, %c0_40, %c0_41], %57 {strides = array<i32>} : memref<1x16x128xf32, #tpu.memory_space<vmem>>, vector<1x16x128xf32>,
    return
  }
  func.func @transform_0(%arg0: i32) -> (i32, i32, i32) {
    %c0_i32 = arith.constant 0 : i32
    %c0_i32_0 = arith.constant 0 : i32
    %c0_i32_1 = arith.constant 0 : i32
    return %arg0, %c0_i32, %c0_i32_0 : i32, i32, i32
  }
  func.func @transform_1(%arg0: i32) -> (i32, i32, i32) {
    %c0_i32 = arith.constant 0 : i32
    %c0_i32_0 = arith.constant 0 : i32
    %c0_i32_1 = arith.constant 0 : i32
    %c0_i32_2 = arith.constant 0 : i32
    return %c0_i32, %c0_i32_0, %c0_i32_1 : i32, i32, i32
  }
  func.func @transform_2(%arg0: i32) -> (i32, i32) {
    %c0_i32 = arith.constant 0 : i32
    %c0_i32_0 = arith.constant 0 : i32
    %c0_i32_1 = arith.constant 0 : i32
    return %c0_i32, %c0_i32_0 : i32, i32
  }
  func.func @transform_3(%arg0: i32) -> (i32, i32) {
    %c0_i32 = arith.constant 0 : i32
    %c0_i32_0 = arith.constant 0 : i32
    %c0_i32_1 = arith.constant 0 : i32
    return %c0_i32, %c0_i32_0 : i32, i32
  }
  func.func @transform_4(%arg0: i32) -> (i32, i32) {
    %c0_i32 = arith.constant 0 : i32
    %c0_i32_0 = arith.constant 0 : i32
    %c0_i32_1 = arith.constant 0 : i32
    return %c0_i32, %c0_i32_0 : i32, i32
  }
  func.func @transform_5(%arg0: i32) -> (i32, i32, i32) {
    %c0_i32 = arith.constant 0 : i32
    %c0_i32_0 = arith.constant 0 : i32
    %c0_i32_1 = arith.constant 0 : i32
    return %arg0, %c0_i32, %c0_i32_0 : i32, i32, i32
  }
  func.func @transform_6(%arg0: i32) -> (i32, i32, i32) {
    %c0_i32 = arith.constant 0 : i32
    %c0_i32_0 = arith.constant 0 : i32
    %c0_i32_1 = arith.constant 0 : i32
    return %arg0, %c0_i32, %c0_i32_0 : i32, i32, i32
  }
}

</mosaic_0001>

<bundles_post_ra>
// kernel: tile.63
= control target key start
LH: loop header
LB: loop body
LE: loop exit
PB: predicated region body
PF: predicated region fallthrough
CT: control target
= control target key end

     0   :  { %s22_s0 = inlined_call_operand.vmem [shape: f32[2], index: 0, kind: input, shape index: {}]   ;;  %s23_s1 = inlined_call_operand.vmem [shape: f32[8,2], index: 1, kind: output, shape index: {}]  }
   0x1   :  { %v4_v0 = vld [vmem:[%s22_s0] ss:$0 sm:$0xff] }
   0x2   :  { %5 = vst [vmem:[%s23_s1] sm:$0xff] %v4_v0 }

// kernel: tile.68
= control target key start
LH: loop header
LB: loop body
LE: loop exit
PB: predicated region body
PF: predicated region fallthrough
CT: control target
= control target key end

     0   :  { %s67_s10 = smov 14   ;;  %s68_s11 = smov 10   ;;  %vm3_vm0 = vcmask 15360   ;;  %vm9_vm1 = vcmask 130160   ;;  %vm15_vm2 = vcmask 113760   ;;  %vm21_vm3 = vcmask 97360   ;;  %s111_s0 = inlined_call_operand.vmem [shape: f32[8,2], index: 0, kind: input, shape index: {}]   ;;  %s112_s1 = inlined_call_operand.vmem [shape: f32[1,16], index: 1, kind: output, shape index: {}]  }
   0x1   :  { %v53_v0 = vld [vmem:[%s111_s0 + $0x7] sm:$0x1]   ;;  %v55_v1 = vld [vmem:[%s111_s0 + $0x5] sm:$0x1]   ;;  %v57_v2 = vld [vmem:[%s111_s0 + $0x3] sm:$0x1]  }
   0x2   :  { %7 = vrot.lane.b32.xlu0 %v53_v0, %s67_s10  ;;  %19 = vrot.lane.b32.xlu1 %v55_v1, %s68_s11  ;;  %s69_s14 = smov 6   ;;  %v54_v3 = vld [vmem:[%s111_s0 + $0x6] sm:$0x1]   ;;  %v56_v4 = vld [vmem:[%s111_s0 + $0x4] sm:$0x1]   ;;  %s70_s21 = smov 12  }
   0x3   :  { %31 = vrot.lane.b32.xlu2 %v57_v2, %s69_s14  ;;  %v58_v5 = vld [vmem:[%s111_s0 + $0x2] sm:$0x1]   ;;  %s71_s22 = smov 8   ;;  %s72_s23 = smov 4   ;;  %v59_v6 = vld [vmem:[%s111_s0 + $0x1] sm:$0x1]  }
   0x4   :  { %s73_s26 = smov 2   ;;  %v2_v7 = vld [vmem:[%s111_s0] sm:$0x1]   ;;  %vm27_vm4 = vcmask 80960   ;;  %vm33_vm5 = vcmask 64560   ;;  %vm39_vm6 = vcmask 48160  }
   0x5   :  { %4 = vst.msk [vmem:[#allocation0] sm:$0x1] %vm3_vm0, %v2_v7   ;;  %vm45_vm7 = vcmask 31760  }
   0xa   :  { %13 = vrot.lane.b32.xlu0 %v54_v3, %s70_s21  ;;  %25 = vrot.lane.b32.xlu1 %v56_v4, %s71_s22 }
   0xb   :  { %37 = vrot.lane.b32.xlu2 %v58_v5, %s72_s23 }
  0x12   :  { %43 = vrot.lane.b32.xlu0 %v59_v6, %s73_s26 }
  0x5d   :  { %v32_v8 = vpop.permute.xlu2 %31  }
  0x65   :  { %v38_v9 = vpop.permute.xlu2 %37  }
  0x74   :  { %v8_v10 = vpop.permute.xlu0 %7   ;;  %v20_v11 = vpop.permute.xlu1 %19  }
  0x75   :  { %10 = vst.msk [vmem:[#allocation0] sm:$0x1] %vm9_vm1, %v8_v10  }
  0x7c   :  { %v14_v12 = vpop.permute.xlu0 %13   ;;  %v26_v13 = vpop.permute.xlu1 %25  }
  0x7d   :  { %16 = vst.msk [vmem:[#allocation0] sm:$0x1] %vm15_vm2, %v14_v12  }
  0x7e   :  { %22 = vst.msk [vmem:[#allocation0] sm:$0x1] %vm21_vm3, %v20_v11  }
  0x7f   :  { %28 = vst.msk [vmem:[#allocation0] sm:$0x1] %vm27_vm4, %v26_v13  }
  0x80   :  { %34 = vst.msk [vmem:[#allocation0] sm:$0x1] %vm33_vm5, %v32_v8  }
  0x81   :  { %40 = vst.msk [vmem:[#allocation0] sm:$0x1] %vm39_vm6, %v38_v9  }
  0x84   :  { %v44_v14 = vpop.permute.xlu0 %43  }
  0x85   :  { %46 = vst.msk [vmem:[#allocation0] sm:$0x1] %vm45_vm7, %v44_v14  }
  0x8c   :  { %v49_v15 = vld [vmem:[#allocation0] sm:$0x1] }
  0x8d   :  { %52 = vst [vmem:[%s112_s1] sm:$0x1] %v49_v15 }

// kernel: tile.73
= control target key start
LH: loop header
LB: loop body
LE: loop exit
PB: predicated region body
PF: predicated region fallthrough
CT: control target
= control target key end

     0   :  { %s22_s0 = inlined_call_operand.vmem [shape: f32[2], index: 0, kind: input, shape index: {}]   ;;  %s23_s1 = inlined_call_operand.vmem [shape: f32[4,2], index: 1, kind: output, shape index: {}]  }
   0x1   :  { %v4_v0 = vld [vmem:[%s22_s0] ss:$0 sm:$0xff] }
   0x2   :  { %5 = vst [vmem:[%s23_s1] sm:$0xf] %v4_v0 }

// kernel: tile.78
= control target key start
LH: loop header
LB: loop body
LE: loop exit
PB: predicated region body
PF: predicated region fallthrough
CT: control target
= control target key end

     0   :  { %s37_s8 = smov 2   ;;  %s38_s9 = smov 4   ;;  %vm7_vm0 = vcmask 15360   ;;  %vm13_vm1 = vcmask 64560   ;;  %vm19_vm2 = vcmask 48160   ;;  %vm25_vm3 = vcmask 31760   ;;  %s55_s0 = inlined_call_operand.vmem [shape: f32[4,2], index: 0, kind: input, shape index: {}]   ;;  %s56_s1 = inlined_call_operand.vmem [shape: f32[1,8], index: 1, kind: output, shape index: {}]  }
   0x1   :  { %v4_v0 = vld [vmem:[%s55_s0] sm:$0xf]  ;;  %s36_s0 = smov 6  }
   0x2   :  { %5 = vst [vmem:[#allocation1] sm:$0xf] %v4_v0 }
   0x9   :  { %v10_v1 = vld [vmem:[#allocation1 + $0x3] sm:$0x1]   ;;  %v22_v2 = vld [vmem:[#allocation1 + $0x1] sm:$0x1]   ;;  %v16_v3 = vld [vmem:[#allocation1 + $0x2] sm:$0x1]  }
   0xa   :  { %11 = vrot.lane.b32.xlu0 %v10_v1, %s36_s0  ;;  %23 = vrot.lane.b32.xlu1 %v22_v2, %s37_s8  ;;  %v6_v4 = vld [vmem:[#allocation1] sm:$0x1]  }
   0xb   :  { %8 = vst.msk [vmem:[#allocation0] sm:$0x1] %vm7_vm0, %v6_v4  }
  0x12   :  { %17 = vrot.lane.b32.xlu0 %v16_v3, %s38_s9 }
  0x7c   :  { %v12_v5 = vpop.permute.xlu0 %11   ;;  %v24_v6 = vpop.permute.xlu1 %23  }
  0x7d   :  { %14 = vst.msk [vmem:[#allocation0] sm:$0x1] %vm13_vm1, %v12_v5  }
  0x84   :  { %v18_v7 = vpop.permute.xlu0 %17  }
  0x85   :  { %20 = vst.msk [vmem:[#allocation0] sm:$0x1] %vm19_vm2, %v18_v7  }
  0x86   :  { %26 = vst.msk [vmem:[#allocation0] sm:$0x1] %vm25_vm3, %v24_v6  }
  0x8d   :  { %v29_v8 = vld [vmem:[#allocation0] sm:$0x1] }
  0x8e   :  { %32 = vst [vmem:[%s56_s1] sm:$0x1] %v29_v8 }

// kernel: conv_branch_nchw.6
= control target key start
LH: loop header
LB: loop body
LE: loop exit
PB: predicated region body
PF: predicated region fallthrough
CT: control target
= control target key end

     0   :  { %s1040_s12 = smov 0   ;;  %s1206_s0 = inlined_call_operand.vmem [shape: bf16[2,16,64], index: 0, kind: input, shape index: {}]   ;;  %s1207_s1 = inlined_call_operand.vmem [shape: bf16[7,60,16], index: 1, kind: input, shape index: {}]   ;;  %s1208_s2 = inlined_call_operand.vmem [shape: f32[2,16], index: 2, kind: input, shape index: {}]   ;;  %s1209_s3 = inlined_call_operand.vmem [shape: bf16[2,8,16], index: 3, kind: output, shape index: {}]  }
   0x1 LB: > { %s785_s13 = sadd.s32 4294967295, %s1017_s12   ;;  %p789_p0 = scmp.ge.s32.totalorder %s1017_s12, 1  ;;  %s1017_s12 = sphi %s1040_s12, %s13_s12  }
   0x2   : > { %p137_p1 = scmp.lt.s32.totalorder %s1017_s12, 3 }
   0x4   : > { %p138_p2 = pnand %p789_p0, %p137_p1 }
   0x5   : > { %p160_p3 = scmp.lt.s32.totalorder (!%p138_p2), %s785_s13, 1  ;;  %s1019_s18 = smov (!%p138_p2), 124  }
   0x6   : > { %141 = sbr.rel (%p138_p2) target bundleno = 343 (0x157), region = 32 }
   0xb   : > { %s1211_s13 = smov (!%p160_p3, %s785_s13), 1  ;;  %v832_v4 = vld [vmem:[%s1207_s1 + $0x18] sm:$0xf]  ;;  %v966_v5 = vld [vmem:[%s1207_s1 + $0x18] sm:$0x30]  ;;  %vm339_vm0 = vcmask 1045504  }
   0xc   : > { %s962_s14 = sshll.u32 %s1211_s13, 3  ;;  %v833_v6 = vor.u32 %v966_v5, %v832_v4  ;;  %v857_v7 = vld [vmem:[%s1207_s1 + $0x58] sm:$0xf]  ;;  %v974_v8 = vld [vmem:[%s1207_s1 + $0x58] sm:$0x30]  ;;  %v965_v11 = vld [vmem:[%s1207_s1 + $0x10] sm:$0xff] }
   0xd   : > { %s164_s17 = scalar_lea.vmem %s1206_s0, %s962_s14  ;;  %v858_v10 = vor.u32 %v974_v8, %v857_v7  ;;  %v815_v12 = vld [vmem:[%s1207_s1 + $0x38] sm:$0xf]  ;;  %v970_v13 = vld [vmem:[%s1207_s1 + $0x38] sm:$0x30]  ;;  %v973_v18 = vld [vmem:[%s1207_s1 + $0x50] sm:$0xff]  ;;  %vm190_vm1 = vcmask 1040384  }
   0xe   : > { %v992_v0 = vld [vmem:[%s164_s17] sm:$0xff]   ;;  %v437_v9 = vsel %vm339_vm0, %v833_v6, 0  ;;  %v816_v15 = vor.u32 %v970_v13, %v815_v12  ;;  %v882_v16 = vld [vmem:[%s1207_s1 + $0x78] sm:$0xf]  ;;  %v978_v17 = vld [vmem:[%s1207_s1 + $0x78] sm:$0x30] }
   0xf   : > { %v993_v1 = vunpack.c.l.bf16 %v992_v0  ;;  %v994_v2 = vunpack.c.h.bf16 %v992_v0  ;;  %443 = vmatpush.bf16.msra.mxu1 %v437_v9  ;;  %v490_v14 = vsel %vm339_vm0, %v858_v10, 0  ;;  %v883_v19 = vor.u32 %v978_v17, %v882_v16  ;;  %v964_v23 = vld [vmem:[%s1207_s1 + $0x8] sm:$0xff]  ;;  %v969_v24 = vld [vmem:[%s1207_s1 + $0x30] sm:$0xff]  ;;  %v963_v31 = vld [vmem:[%s1207_s1] sm:$0xff] }
  0x10   : > { %496 = vmatpush.bf16.msra.mxu2 %v490_v14  ;;  %v396_v20 = vsel %vm339_vm0, %v816_v15, 0  ;;  %v977_v27 = vld [vmem:[%s1207_s1 + $0x70] sm:$0xff]  ;;  %v972_v28 = vld [vmem:[%s1207_s1 + $0x48] sm:$0xff]  ;;  %vm194_vm2 = vcmask 1041409   ;;  %vm202_vm3 = vcmask 1043459   ;;  %v971_v36 = vld [vmem:[%s1207_s1 + $0x40] sm:$0xff] }
  0x11   : > { %v1004_v3 = vpack.i.bf16 %v994_v2, %v993_v1  ;;  %402 = vmatpush.bf16.msra.mxu0 %v396_v20  ;;  %v545_v22 = vsel %vm339_vm0, %v883_v19, 0  ;;  %v968_v32 = vld [vmem:[%s1207_s1 + $0x28] sm:$0xff]  ;;  %vm234_vm4 = vcmask 484352   ;;  %vm198_vm5 = vcmask 1042434   ;;  %v967_v15 = vld [vmem:[%s1207_s1 + $0x20] sm:$0xff] }
  0x12   : > { %551 = vmatpush.bf16.msra.mxu3 %v545_v22  ;;  %v976_v35 = vld [vmem:[%s1207_s1 + $0x68] sm:$0xff]  ;;  %v975_v16 = vld [vmem:[%s1207_s1 + $0x60] sm:$0xff]  ;;  %vm323_vm6 = vcmask 1044484   ;;  %vm325_vm7 = vcmask 1045509   ;;  %vm327_vm8 = vcmask 1046534   ;;  %vm329_vm9 = vcmask 1047559  }
  0x13   : > { %1005 = vrot.lane.b32.xlu0 %v1004_v3, %s1019_s18  ;;  %444 = vmatpush.bf16.msra.mxu1 %v965_v11  ;;  %vm335_vm10 = vcmask 1041408   ;;  %vm336_vm11 = vsmask.f32 1280  ;;  %vm340_vm12 = vsmask.f32 5376  ;;  %vm390_vm15 = vcmask 490496  }
  0x14   : > { %497 = vmatpush.bf16.msra.mxu2 %v973_v18  ;;  %vm337_vm13 = vmand %vm335_vm10, %vm336_vm11  ;;  %s792_s18 = sshll.u32 %s1211_s13, 2 }
  0x15   : > { %403 = vmatpush.bf16.msra.mxu0 %v969_v24  ;;  %vm341_vm14 = vmand %vm339_vm0, %vm340_vm12  ;;  %s168_s21 = scalar_lea.vmem %s1209_s3, %s792_s18 }
  0x16   : > { %552 = vmatpush.bf16.msra.mxu3 %v977_v27 }
  0x17   : > { %445 = vmatpush.bf16.msra.mxu1 %v964_v23 }
  0x18   : > { %498 = vmatpush.bf16.msra.mxu2 %v972_v28 }
  0x19   : > { %404 = vmatpush.bf16.msra.mxu0 %v968_v32 }
  0x1a   : > { %553 = vmatpush.bf16.msra.mxu3 %v976_v35 }
  0x1b   : > { %446 = vmatpush.bf16.msra.mxu1 %v963_v31 }
  0x1c   : > { %499 = vmatpush.bf16.msra.mxu2 %v971_v36 }
  0x1d   : > { %405 = vmatpush.bf16.msra.mxu0 %v967_v15 }
  0x1e   : > { %554 = vmatpush.bf16.msra.mxu3 %v975_v16 }
  0x85   : > { %v1006_v21 = vpop.permute.xlu0 %1005 }
  0x86   : > { %v1008_v25 = vunpack.i.h.bf16 %v1006_v21  ;;  %v1007_v26 = vunpack.i.l.bf16 %v1006_v21 }
  0x88   : > { %v183_v29 = vmax.f32 %v994_v2, %v1008_v25  ;;  %v182_v30 = vmax.f32 %v993_v1, %v1007_v26 }
  0x8a   : > { %v185_v33 = vpack.c.bf16 %v183_v29, %v183_v29  ;;  %v184_v34 = vpack.c.bf16 %v182_v30, %v182_v30 }
  0x8c   : > { %v189_v37 = vrot.slane %v185_v33, 3  ;;  %v188_v38 = vrot.slane %v184_v34, 3 }
  0x8e   : > { %v208_v39 = vsel %vm190_vm1, %v185_v33, %v189_v37  ;;  %v209_v40 = vsel %vm194_vm2, %v185_v33, %v189_v37  ;;  %v215_v41 = vsel %vm202_vm3, %v185_v33, %v189_v37  ;;  %v193_v42 = vsel %vm190_vm1, %v184_v34, %v188_v38 }
  0x8f   : > { %v211_v43 = vrot.slane %v209_v40, 1  ;;  %v217_v44 = vrot.slane %v215_v41, 3  ;;  %v230_v45 = vunpack.c.l.bf16 %v208_v39  ;;  %v195_v46 = vsel %vm194_vm2, %v184_v34, %v188_v38 }
  0x90   : > { %v197_v47 = vrot.slane %v195_v46, 1  ;;  %v203_v48 = vsel %vm202_vm3, %v184_v34, %v188_v38  ;;  %v226_v49 = vunpack.c.l.bf16 %v193_v42  ;;  %v199_v50 = vsel %vm198_vm5, %v184_v34, %v188_v38 }
  0x91   : > { %v231_v51 = vunpack.c.l.bf16 %v211_v43  ;;  %v233_v52 = vunpack.c.l.bf16 %v217_v44  ;;  %v263_v53 = vsel %vm234_vm4, %v230_v45, -inf  ;;  %v205_v54 = vrot.slane %v203_v48, 3 }
  0x92   : > { %v264_v55 = vrot.slane %v263_v53, 4  ;;  %v227_v56 = vunpack.c.l.bf16 %v197_v47  ;;  %v235_v57 = vsel %vm234_vm4, %v226_v49, -inf  ;;  %v201_v58 = vrot.slane %v199_v50, 2 }
  0x93   : > { %v270_v59 = vsel %vm234_vm4, %v231_v51, -inf  ;;  %v284_v60 = vsel %vm234_vm4, %v233_v52, -inf  ;;  %v229_v61 = vunpack.c.l.bf16 %v205_v54  ;;  %v236_v62 = vrot.slane %v235_v57, 4 }
  0x94   : > { %v265_v63 = vmax.f32 %v263_v53, %v264_v55  ;;  %v271_v0 = vrot.slane %v270_v59, 4  ;;  %v285_v1 = vrot.slane %v284_v60, 4  ;;  %v242_v2 = vsel %vm234_vm4, %v227_v56, -inf }
  0x95   : > { %v237_v3 = vmax.f32 %v235_v57, %v236_v62  ;;  %v243_v4 = vrot.slane %v242_v2, 4  ;;  %v256_v5 = vsel %vm234_vm4, %v229_v61, -inf  ;;  %v212_v6 = vsel %vm198_vm5, %v185_v33, %v189_v37  ;;  %v986_v62 = vld [vmem:[%s1207_s1 + $0xb8] sm:$0x30] }
  0x96   : > { %v266_v7 = vrot.slane %v265_v63, 2  ;;  %v272_v8 = vmax.f32 %v270_v59, %v271_v0  ;;  %v286_v9 = vmax.f32 %v284_v60, %v285_v1  ;;  %v257_v10 = vrot.slane %v256_v5, 4  ;;  %v990_v0 = vld [vmem:[%s1207_s1 + $0xd8] sm:$0x30] }
  0x97   : > { %v238_v11 = vrot.slane %v237_v3, 2  ;;  %v244_v12 = vmax.f32 %v242_v2, %v243_v4  ;;  %v214_v13 = vrot.slane %v212_v6, 2  ;;  %v228_v14 = vunpack.c.l.bf16 %v201_v58  ;;  %v932_v58 = vld [vmem:[%s1207_s1 + $0xb8] sm:$0xf]  ;;  %v982_v4 = vld [vmem:[%s1207_s1 + $0x98] sm:$0x30] }
  0x98   : > { %v273_v17 = vrot.slane %v272_v8, 2  ;;  %v287_v18 = vrot.slane %v286_v9, 2  ;;  %v258_v19 = vmax.f32 %v256_v5, %v257_v10  ;;  %v267_v20 = vmax.f32 %v265_v63, %v266_v7  ;;  %v957_v63 = vld [vmem:[%s1207_s1 + $0xd8] sm:$0xf] }
  0x99   : > { %v239_v21 = vmax.f32 %v237_v3, %v238_v11  ;;  %v245_v22 = vrot.slane %v244_v12, 2  ;;  %v232_v23 = vunpack.c.l.bf16 %v214_v13  ;;  %v249_v24 = vsel %vm234_vm4, %v228_v14, -inf  ;;  %v907_v3 = vld [vmem:[%s1207_s1 + $0x98] sm:$0xf] }
  0x9a   : > { %v274_v25 = vmax.f32 %v272_v8, %v273_v17  ;;  %v259_v26 = vrot.slane %v258_v19, 2  ;;  %v250_v27 = vrot.slane %v249_v24, 4  ;;  %v288_v31 = vmax.f32 %v286_v9, %v287_v18 }
  0x9b   : > { %v240_v28 = vrot.slane %v239_v21, 1  ;;  %v246_v29 = vmax.f32 %v244_v12, %v245_v22  ;;  %v277_v30 = vsel %vm234_vm4, %v232_v23, -inf  ;;  %v268_v34 = vrot.slane %v267_v20, 1  ;;  %v989_v23 = vld [vmem:[%s1207_s1 + $0xd0] sm:$0xff] }
  0x9c   : > { %v260_v32 = vmax.f32 %v258_v19, %v259_v26  ;;  %v251_v33 = vmax.f32 %v249_v24, %v250_v27  ;;  %v275_v35 = vrot.slane %v274_v25, 1  ;;  %v278_v38 = vrot.slane %v277_v30, 4  ;;  %v981_v27 = vld [vmem:[%s1207_s1 + $0x90] sm:$0xff] }
  0x9d   : > { %v241_v36 = vmax.f32 %v239_v21, %v240_v28  ;;  %v247_v37 = vrot.slane %v246_v29, 1  ;;  %v289_v39 = vrot.slane %v288_v31, 1  ;;  %v269_v48 = vmax.f32 %v267_v20, %v268_v34  ;;  %v985_v21 = vld [vmem:[%s1207_s1 + $0xb0] sm:$0xff]  ;;  %v984_v34 = vld [vmem:[%s1207_s1 + $0xa8] sm:$0xff] }
  0x9e   : > { %v252_v40 = vrot.slane %v251_v33, 2  ;;  %v261_v41 = vrot.slane %v260_v32, 1  ;;  %v276_v42 = vmax.f32 %v274_v25, %v275_v35  ;;  %v279_v45 = vmax.f32 %v277_v30, %v278_v38  ;;  %v988_v35 = vld [vmem:[%s1207_s1 + $0xc8] sm:$0xff] }
  0x9f   : > { %v248_v43 = vmax.f32 %v246_v29, %v247_v37  ;;  %v291_v44 = vpack.c.bf16 %v241_v36, %v241_v36  ;;  %v290_v49 = vmax.f32 %v288_v31, %v289_v39  ;;  %v295_v60 = vpack.c.bf16 %v269_v48, %v269_v48  ;;  %v980_v37 = vld [vmem:[%s1207_s1 + $0x88] sm:$0xff] }
  0xa0   : > { %v253_v46 = vmax.f32 %v251_v33, %v252_v40  ;;  %v262_v47 = vmax.f32 %v260_v32, %v261_v41  ;;  %v280_v51 = vrot.slane %v279_v45, 2  ;;  %v296_v54 = vpack.c.bf16 %v276_v42, %v276_v42  ;;  %v983_v40 = vld [vmem:[%s1207_s1 + $0xa0] sm:$0xff] }
  0xa1   : > { %v292_v50 = vpack.c.bf16 %v248_v43, %v248_v43  ;;  %v307_v52 = vperm.slane %v291_v44, 0  ;;  %v298_v61 = vpack.c.bf16 %v290_v49, %v290_v49  ;;  %v933_v10 = vor.u32 %v986_v62, %v932_v58  ;;  %v987_v41 = vld [vmem:[%s1207_s1 + $0xc0] sm:$0xff] }
  0xa2   : > { %v254_v53 = vrot.slane %v253_v46, 1  ;;  %v281_v55 = vmax.f32 %v279_v45, %v280_v51  ;;  %v294_v56 = vpack.c.bf16 %v262_v47, %v262_v47  ;;  %v312_v6 = vperm.slane %v296_v54, 0  ;;  %v979_v43 = vld [vmem:[%s1207_s1 + $0x80] sm:$0xff] }
  0xa3   : > { %v308_v57 = vperm.slane %v292_v50, 0  ;;  %v315_v7 = vunpack.c.l.b16 %v307_v52  ;;  %v958_v11 = vor.u32 %v990_v0, %v957_v63  ;;  %v311_v13 = vperm.slane %v295_v60, 0 }
  0xa4   : > { %v255_v59 = vmax.f32 %v253_v46, %v254_v53  ;;  %v282_v1 = vrot.slane %v281_v55, 1  ;;  %v310_v9 = vperm.slane %v294_v56, 0  ;;  %v314_v14 = vperm.slane %v298_v61, 0 }
  0xa5   : > { %v316_v2 = vunpack.c.l.b16 %v308_v57  ;;  %v908_v15 = vor.u32 %v982_v4, %v907_v3  ;;  %v653_v18 = vsel %vm339_vm0, %v933_v10, 0  ;;  %v706_v19 = vsel %vm339_vm0, %v958_v11, 0  ;;  %v1009_v11 = vld [vmem:[%s1208_s2] ss:$0 sm:$0xff] }
  0xa6   : > { %v293_v5 = vpack.c.bf16 %v255_v59, %v255_v59  ;;  %v283_v8 = vmax.f32 %v281_v55, %v282_v1  ;;  %659 = vmatpush.bf16.msrb.mxu1 %v653_v18  ;;  %712 = vmatpush.bf16.msrb.mxu2 %v706_v19  ;;  %v318_v25 = vunpack.c.l.b16 %v310_v9  ;;  %v320_v26 = vunpack.c.l.b16 %v312_v6 }
  0xa7   : > { %v324_v17 = vsel %vm323_vm6, %v316_v2, %v315_v7  ;;  %v598_v22 = vsel %vm339_vm0, %v908_v15, 0  ;;  %v319_v28 = vunpack.c.l.b16 %v311_v13  ;;  %v322_v29 = vunpack.c.l.b16 %v314_v14  ;;  %v1010_v13 = vld [vmem:[%s1208_s2 + $0x1] ss:$0 sm:$0xff] }
  0xa8   : > { %v309_v12 = vperm.slane %v293_v5, 0  ;;  %v297_v16 = vpack.c.bf16 %v283_v8, %v283_v8  ;;  %604 = vmatpush.bf16.msrb.mxu0 %v598_v22  ;;  %vm730_vm0 = vcmask 125952  }
  0xaa   : > { %v317_v20 = vunpack.c.l.b16 %v309_v12  ;;  %v313_v24 = vperm.slane %v297_v16, 0  ;;  %660 = vmatpush.bf16.msrb.mxu1 %v985_v21  ;;  %713 = vmatpush.bf16.msrb.mxu2 %v989_v23 }
  0xac   : > { %v326_v30 = vsel %vm325_vm7, %v317_v20, %v324_v17  ;;  %v321_v31 = vunpack.c.l.b16 %v313_v24  ;;  %605 = vmatpush.bf16.msrb.mxu0 %v981_v27 }
  0xad   : > { %v328_v32 = vsel %vm327_vm8, %v318_v25, %v326_v30 }
  0xae   : > { %v330_v33 = vsel %vm329_vm9, %v319_v28, %v328_v32  ;;  %v331_v36 = vsel %vm194_vm2, %v321_v31, %v320_v26  ;;  %661 = vmatpush.bf16.msrb.mxu1 %v984_v34  ;;  %714 = vmatpush.bf16.msrb.mxu2 %v988_v35 }
  0xaf   : > { %v332_v38 = vsel %vm198_vm5, %v322_v29, %v331_v36 }
  0xb0   : > { %v333_v39 = vpack.c.b16 %v332_v38, %v330_v33  ;;  %606 = vmatpush.bf16.msrb.mxu0 %v980_v37 }
  0xb2   : > { %v338_v42 = vsel %vm337_vm13, 0, %v333_v39  ;;  %662 = vmatpush.bf16.msrb.mxu1 %v983_v40  ;;  %715 = vmatpush.bf16.msrb.mxu2 %v987_v41 }
  0xb3   : > { %v342_v44 = vsel %vm341_vm14, %v338_v42, 0 }
  0xb4   : > { %834 = vmatmul.msk.bf16.vlgmr.msra.gmra.mxu1 %vm390_vm15, %v342_v44  ;;  %v462_v45 = vrot.slane %v342_v44, 1  ;;  %v361_v46 = vshrl.u32 %v342_v44, 16  ;;  %v363_v47 = vshll.u32 %v342_v44, 16  ;;  %607 = vmatpush.bf16.msrb.mxu0 %v979_v43  ;;  %v678_v56 = vrot.slane %v342_v44, 3 }
  0xb5   : > { %v570_v57 = vrot.slane %v342_v44, 2 }
  0xb6   : > { %859 = vmatmul.msk.bf16.vlgmr.msra.gmra.mxu2 %vm390_vm15, %v462_v45  ;;  %v365_v48 = vrot.slane %v363_v47, 1  ;;  %v515_v49 = vrot.slane %v361_v46, 1  ;;  %v516_v50 = vrot.slane %v363_v47, 2  ;;  %v623_v53 = vrot.slane %v361_v46, 2 }
  0xb7   : > { %v624_v54 = vrot.slane %v363_v47, 3 }
  0xb8   : > { %v366_v51 = vor.u32 %v365_v48, %v361_v46  ;;  %v517_v52 = vor.u32 %v516_v50, %v515_v49 }
  0xb9   : > { %v625_v55 = vor.u32 %v624_v54, %v623_v53 }
  0xba   : > { %817 = vmatmul.msk.bf16.vlgmr.msra.gmra.mxu0 %vm390_vm15, %v366_v51  ;;  %884 = vmatmul.msk.bf16.vlgmr.msra.gmra.mxu3 %vm390_vm15, %v517_v52 }
  0xc4   : > { %934 = vmatmul.msk.bf16.vlgmr.msrb.gmra.mxu1 %vm390_vm15, %v625_v55 }
  0xc6   : > { %959 = vmatmul.msk.bf16.vlgmr.msrb.gmra.mxu2 %vm390_vm15, %v678_v56 }
  0xca   : > { %909 = vmatmul.msk.bf16.vlgmr.msrb.gmra.mxu0 %vm390_vm15, %v570_v57 }
 0x131   : > { %v448_v58 = vpop.f32.mrf.mxu1 }
 0x137   : > { %v407_v59 = vpop.f32.mrf.mxu0 }
 0x138   : > { %v449_v0 = vadd.f32 %v448_v58, %v407_v59 }
 0x139   : > { %v450_v60 = vpop.f32.mrf.mxu1  ;;  %v501_v61 = vpop.f32.mrf.mxu2 }
 0x13a   : > { %v505_v3 = vadd.f32 %v501_v61, %v449_v0 }
 0x13d   : > { %v556_v62 = vpop.f32.mrf.mxu3 }
 0x13e   : > { %v560_v5 = vadd.f32 %v556_v62, %v505_v3 }
 0x13f   : > { %v409_v63 = vpop.f32.mrf.mxu0 }
 0x141   : > { %v503_v1 = vpop.f32.mrf.mxu2  ;;  %v664_v2 = vpop.f32.mrf.mxu1 }
 0x145   : > { %v558_v4 = vpop.f32.mrf.mxu3 }
 0x147   : > { %v609_v6 = vpop.f32.mrf.mxu0 }
 0x148   : > { %v613_v7 = vadd.f32 %v609_v6, %v560_v5 }
 0x149   : > { %v666_v8 = vpop.f32.mrf.mxu1  ;;  %v717_v9 = vpop.f32.mrf.mxu2 }
 0x14a   : > { %v668_v10 = vadd.f32 %v664_v2, %v613_v7 }
 0x14c   : > { %v721_v12 = vadd.f32 %v717_v9, %v668_v10 }
 0x14e   : > { %v724_v14 = vmul.f32 %v1009_v11, %v721_v12 }
 0x14f   : > { %v611_v15 = vpop.f32.mrf.mxu0 }
 0x150   : > { %v727_v16 = vadd.f32 %v1010_v13, %v724_v14 }
 0x151   : > { %v719_v17 = vpop.f32.mrf.mxu2 }
 0x152   : > { %v728_v18 = vmax.f32 %v727_v16, 0.0 }
 0x154   : > { %v729_v19 = vpack.c.bf16 %v728_v18, %v728_v18 }
 0x156   : > { %731 = vst.msk [vmem:[%s168_s21] sm:$0xf] %vm730_vm0, %v729_v19 }
 0x157 PF: > { %s13_s12 = sadd.s32 1, %s1017_s12  }
 0x158   : > { %p10_p4 = scmp.ge.s32.totalorder %s13_s12, 4  }
 0x15a   :  { %12 = sbr.rel (!%p10_p4) target bundleno = 1 (0x1), region = 68 }

// kernel: conv_branch_nchw.7
= control target key start
LH: loop header
LB: loop body
LE: loop exit
PB: predicated region body
PF: predicated region fallthrough
CT: control target
= control target key end

     0   :  { %s557_s12 = smov 0   ;;  %s632_s0 = inlined_call_operand.vmem [shape: bf16[2,8,16], index: 0, kind: input, shape index: {}]   ;;  %s633_s1 = inlined_call_operand.vmem [shape: bf16[5,14,8], index: 1, kind: input, shape index: {}]   ;;  %s634_s2 = inlined_call_operand.vmem [shape: f32[2,8], index: 2, kind: input, shape index: {}]   ;;  %s635_s3 = inlined_call_operand.vmem [shape: bf16[2,4,8], index: 3, kind: output, shape index: {}]  }
   0x1 LB: > { %s470_s13 = sadd.s32 4294967295, %s534_s12   ;;  %p474_p0 = scmp.ge.s32.totalorder %s534_s12, 1  ;;  %s534_s12 = sphi %s557_s12, %s13_s12  }
   0x2   : > { %p136_p1 = scmp.lt.s32.totalorder %s534_s12, 3 }
   0x4   : > { %p137_p2 = pnand %p474_p0, %p136_p1 }
   0x5   : > { %p158_p3 = scmp.lt.s32.totalorder (!%p137_p2), %s470_s13, 1  ;;  %s536_s18 = smov (!%p137_p2), 126  }
   0x6   : > { %140 = sbr.rel (%p137_p2) target bundleno = 328 (0x148), region = 32 }
   0xb   : > { %s637_s13 = smov (!%p158_p3, %s470_s13), 1  ;;  %v486_v2 = vld [vmem:[%s633_s1] sm:$0xf]  ;;  %v512_v3 = vld [vmem:[%s633_s1] sm:$0x70]  ;;  %vm277_vm0 = vcmask 1046528  }
   0xc   : > { %s475_s14 = sshll.u32 %s637_s13, 2  ;;  %v487_v4 = vor.u32 %v512_v3, %v486_v2  ;;  %v493_v5 = vld [vmem:[%s633_s1 + $0x10] sm:$0xf]  ;;  %v514_v6 = vld [vmem:[%s633_s1 + $0x10] sm:$0x70]  ;;  %vm181_vm1 = vcmask 1041409  }
   0xd   : > { %s161_s17 = scalar_lea.vmem %s632_s0, %s475_s14  ;;  %v494_v7 = vor.u32 %v514_v6, %v493_v5  ;;  %vm185_vm2 = vcmask 1042434   ;;  %vm189_vm3 = vcmask 1043459   ;;  %vm177_vm4 = vcmask 1040384   ;;  %v481_v14 = vld [vmem:[%s633_s1 + $0x8] sm:$0xf] }
   0xe   : > { %v167_v0 = vld [vmem:[%s161_s17] sm:$0xf]  ;;  %v302_v8 = vsel %vm277_vm0, %v487_v4, 0  ;;  %v513_v15 = vld [vmem:[%s633_s1 + $0x8] sm:$0x70]  ;;  %vm201_vm5 = vcmask 107520  }
   0xf   : > { %v168_v1 = vunpack.c.l.bf16 %v167_v0  ;;  %311 = vmatpush.bf16.msra.mxu1 %v302_v8  ;;  %v331_v9 = vsel %vm277_vm0, %v494_v7, 0  ;;  %v482_v16 = vor.u32 %v513_v15, %v481_v14  ;;  %v500_v17 = vld [vmem:[%s633_s1 + $0x18] sm:$0xf]  ;;  %v515_v18 = vld [vmem:[%s633_s1 + $0x18] sm:$0x70]  ;;  %vm247_vm6 = vcmask 1044484  }
  0x10   : > { %340 = vmatpush.bf16.msra.mxu2 %v331_v9  ;;  %v501_v28 = vor.u32 %v515_v18, %v500_v17  ;;  %v507_v38 = vld [vmem:[%s633_s1 + $0x20] sm:$0xf]  ;;  %v516_v43 = vld [vmem:[%s633_s1 + $0x20] sm:$0x70]  ;;  %vm249_vm7 = vcmask 1045509   ;;  %vm255_vm8 = vcmask 1042432  }
  0x11   : > { %170 = vrot.lane.b32.xlu0 %v168_v1, %s536_s18  ;;  %v279_v27 = vsel %vm277_vm0, %v482_v16, 0  ;;  %v508_v44 = vor.u32 %v516_v43, %v507_v38  ;;  %vm273_vm9 = vcmask 113664   ;;  %s476_s18 = sshll.u32 %s637_s13, 1  ;;  %vm415_vm10 = vcmask 58368  }
  0x12   : > { %288 = vmatpush.bf16.msra.mxu0 %v279_v27  ;;  %v362_v34 = vsel %vm277_vm0, %v501_v28, 0  ;;  %s165_s21 = scalar_lea.vmem %s635_s3, %s476_s18 }
  0x13   : > { %371 = vmatpush.bf16.msra.mxu3 %v362_v34  ;;  %v391_v49 = vsel %vm277_vm0, %v508_v44, 0 }
  0x16   : > { %400 = vmatpush.bf16.msrb.mxu0 %v391_v49 }
  0x83   : > { %v171_v10 = vpop.permute.xlu0 %170 }
  0x84   : > { %v173_v11 = vmax.f32 %v168_v1, %v171_v10 }
  0x86   : > { %v174_v12 = vpack.c.bf16 %v173_v11, %v173_v11 }
  0x88   : > { %v176_v13 = vrot.slane %v174_v12, 3 }
  0x8a   : > { %v182_v19 = vsel %vm181_vm1, %v174_v12, %v176_v13  ;;  %v186_v20 = vsel %vm185_vm2, %v174_v12, %v176_v13  ;;  %v190_v21 = vsel %vm189_vm3, %v174_v12, %v176_v13  ;;  %v180_v22 = vsel %vm177_vm4, %v174_v12, %v176_v13 }
  0x8b   : > { %v184_v23 = vrot.slane %v182_v19, 1  ;;  %v188_v24 = vrot.slane %v186_v20, 2  ;;  %v192_v25 = vrot.slane %v190_v21, 3  ;;  %v197_v26 = vunpack.c.l.bf16 %v180_v22 }
  0x8d   : > { %v198_v29 = vunpack.c.l.bf16 %v184_v23  ;;  %v199_v30 = vunpack.c.l.bf16 %v188_v24  ;;  %v200_v31 = vunpack.c.l.bf16 %v192_v25  ;;  %v202_v32 = vsel %vm201_vm5, %v197_v26, -inf }
  0x8e   : > { %v203_v33 = vrot.slane %v202_v32, 4 }
  0x8f   : > { %v209_v35 = vsel %vm201_vm5, %v198_v29, -inf  ;;  %v216_v36 = vsel %vm201_vm5, %v199_v30, -inf  ;;  %v223_v37 = vsel %vm201_vm5, %v200_v31, -inf }
  0x90   : > { %v210_v39 = vrot.slane %v209_v35, 4  ;;  %v217_v40 = vrot.slane %v216_v36, 4  ;;  %v224_v41 = vrot.slane %v223_v37, 4  ;;  %v204_v42 = vmax.f32 %v202_v32, %v203_v33 }
  0x92   : > { %v211_v45 = vmax.f32 %v209_v35, %v210_v39  ;;  %v218_v46 = vmax.f32 %v216_v36, %v217_v40  ;;  %v225_v47 = vmax.f32 %v223_v37, %v224_v41  ;;  %v205_v48 = vrot.slane %v204_v42, 2  ;;  %v526_v39 = vld [vmem:[%s634_s2] ss:$0 sm:$0xff] }
  0x94   : > { %v212_v50 = vrot.slane %v211_v45, 2  ;;  %v219_v51 = vrot.slane %v218_v46, 2  ;;  %v206_v52 = vmax.f32 %v204_v42, %v205_v48  ;;  %v226_v53 = vrot.slane %v225_v47, 2  ;;  %v527_v42 = vld [vmem:[%s634_s2 + $0x1] ss:$0 sm:$0xff] }
  0x96   : > { %v213_v54 = vmax.f32 %v211_v45, %v212_v50  ;;  %v207_v55 = vrot.slane %v206_v52, 1  ;;  %v220_v56 = vmax.f32 %v218_v46, %v219_v51  ;;  %v227_v57 = vmax.f32 %v225_v47, %v226_v53 }
  0x98   : > { %v214_v58 = vrot.slane %v213_v54, 1  ;;  %v208_v59 = vmax.f32 %v206_v52, %v207_v55  ;;  %v221_v60 = vrot.slane %v220_v56, 1  ;;  %v228_v61 = vrot.slane %v227_v57, 1 }
  0x9a   : > { %v215_v62 = vmax.f32 %v213_v54, %v214_v58  ;;  %v222_v63 = vmax.f32 %v220_v56, %v221_v60  ;;  %v229_v0 = vmax.f32 %v227_v57, %v228_v61  ;;  %v230_v1 = vpack.c.bf16 %v208_v59, %v208_v59 }
  0x9c   : > { %v231_v2 = vpack.c.bf16 %v215_v62, %v215_v62  ;;  %v232_v3 = vpack.c.bf16 %v222_v63, %v222_v63  ;;  %v233_v4 = vpack.c.bf16 %v229_v0, %v229_v0  ;;  %v238_v5 = vperm.slane %v230_v1, 0 }
  0x9e   : > { %v239_v6 = vperm.slane %v231_v2, 0  ;;  %v240_v7 = vperm.slane %v232_v3, 0  ;;  %v241_v8 = vperm.slane %v233_v4, 0  ;;  %v242_v9 = vunpack.c.l.b16 %v238_v5 }
  0xa0   : > { %v243_v10 = vunpack.c.l.b16 %v239_v6  ;;  %v244_v11 = vunpack.c.l.b16 %v240_v7  ;;  %v245_v12 = vunpack.c.l.b16 %v241_v8 }
  0xa2   : > { %v246_v13 = vsel %vm189_vm3, %v243_v10, %v242_v9 }
  0xa3   : > { %v248_v14 = vsel %vm247_vm6, %v244_v11, %v246_v13 }
  0xa4   : > { %v250_v15 = vsel %vm249_vm7, %v245_v12, %v248_v14 }
  0xa5   : > { %v251_v16 = vpack.c.b16 %v250_v15, %v250_v15 }
  0xa7   : > { %v254_v17 = vsel %vm177_vm4, 0, %v251_v16 }
  0xa8   : > { %v256_v18 = vsel %vm255_vm8, %v254_v17, 0 }
  0xa9   : > { %488 = vmatmul.msk.bf16.vlgmr.msra.gmra.mxu1 %vm273_vm9, %v256_v18  ;;  %v321_v19 = vrot.slane %v256_v18, 1  ;;  %v262_v20 = vshrl.u32 %v256_v18, 16  ;;  %v264_v21 = vshll.u32 %v256_v18, 16  ;;  %v381_v27 = vrot.slane %v256_v18, 2 }
  0xab   : > { %495 = vmatmul.msk.bf16.vlgmr.msra.gmra.mxu2 %vm273_vm9, %v321_v19  ;;  %v266_v22 = vrot.slane %v264_v21, 1  ;;  %v350_v23 = vrot.slane %v262_v20, 1  ;;  %v351_v24 = vrot.slane %v264_v21, 2 }
  0xad   : > { %v267_v25 = vor.u32 %v266_v22, %v262_v20  ;;  %v352_v26 = vor.u32 %v351_v24, %v350_v23 }
  0xaf   : > { %483 = vmatmul.msk.bf16.vlgmr.msra.gmra.mxu0 %vm273_vm9, %v267_v25  ;;  %502 = vmatmul.msk.bf16.vlgmr.msra.gmra.mxu3 %vm273_vm9, %v352_v26 }
  0xbf   : > { %509 = vmatmul.msk.bf16.vlgmr.msrb.gmra.mxu0 %vm273_vm9, %v381_v27 }
 0x126   : > { %v313_v28 = vpop.f32.mrf.mxu1 }
 0x12c   : > { %v290_v29 = vpop.f32.mrf.mxu0 }
 0x12d   : > { %v314_v34 = vadd.f32 %v313_v28, %v290_v29 }
 0x12e   : > { %v315_v30 = vpop.f32.mrf.mxu1  ;;  %v342_v31 = vpop.f32.mrf.mxu2 }
 0x12f   : > { %v346_v36 = vadd.f32 %v342_v31, %v314_v34 }
 0x132   : > { %v373_v32 = vpop.f32.mrf.mxu3 }
 0x133   : > { %v377_v38 = vadd.f32 %v373_v32, %v346_v36 }
 0x134   : > { %v292_v33 = vpop.f32.mrf.mxu0 }
 0x136   : > { %v344_v35 = vpop.f32.mrf.mxu2 }
 0x13a   : > { %v375_v37 = vpop.f32.mrf.mxu3 }
 0x13c   : > { %v402_v40 = vpop.f32.mrf.mxu0 }
 0x13d   : > { %v406_v41 = vadd.f32 %v402_v40, %v377_v38 }
 0x13f   : > { %v409_v43 = vmul.f32 %v526_v39, %v406_v41 }
 0x141   : > { %v412_v44 = vadd.f32 %v527_v42, %v409_v43 }
 0x143   : > { %v413_v45 = vmax.f32 %v412_v44, 0.0 }
 0x144   : > { %v404_v46 = vpop.f32.mrf.mxu0 }
 0x145   : > { %v414_v47 = vpack.c.bf16 %v413_v45, %v413_v45 }
 0x147   : > { %416 = vst.msk [vmem:[%s165_s21] sm:$0x3] %vm415_vm10, %v414_v47 }
 0x148 PF: > { %s13_s12 = sadd.s32 1, %s534_s12  }
 0x149   : > { %p10_p4 = scmp.ge.s32.totalorder %s13_s12, 4  }
 0x14b   :  { %12 = sbr.rel (!%p10_p4) target bundleno = 1 (0x1), region = 66 }

// kernel: tile.83
= control target key start
LH: loop header
LB: loop body
LE: loop exit
PB: predicated region body
PF: predicated region fallthrough
CT: control target
= control target key end

     0   :  { %s22_s0 = inlined_call_operand.vmem [shape: f32[2], index: 0, kind: input, shape index: {}]   ;;  %s23_s1 = inlined_call_operand.vmem [shape: f32[2,2], index: 1, kind: output, shape index: {}]  }
   0x1   :  { %v4_v0 = vld [vmem:[%s22_s0] ss:$0 sm:$0xff] }
   0x2   :  { %5 = vst [vmem:[%s23_s1] sm:$0x3] %v4_v0 }

// kernel: tile.88
= control target key start
LH: loop header
LB: loop body
LE: loop exit
PB: predicated region body
PF: predicated region fallthrough
CT: control target
= control target key end

     0   :  { %vm7_vm0 = vcmask 15360   ;;  %vm13_vm1 = vcmask 31760   ;;  %s39_s0 = inlined_call_operand.vmem [shape: f32[2,2], index: 0, kind: input, shape index: {}]   ;;  %s40_s1 = inlined_call_operand.vmem [shape: f32[1,4], index: 1, kind: output, shape index: {}]  }
   0x1   :  { %v4_v0 = vld [vmem:[%s39_s0] sm:$0x3]  ;;  %s22_s0 = smov 2  }
   0x2   :  { %5 = vst [vmem:[#allocation1] sm:$0x3] %v4_v0 }
   0x9   :  { %v10_v1 = vld [vmem:[#allocation1 + $0x1] sm:$0x1]   ;;  %v6_v2 = vld [vmem:[#allocation1] sm:$0x1]  }
   0xa   :  { %11 = vrot.lane.b32.xlu0 %v10_v1, %s22_s0  ;;  %8 = vst.msk [vmem:[#allocation0] sm:$0x1] %vm7_vm0, %v6_v2  }
  0x7c   :  { %v12_v3 = vpop.permute.xlu0 %11  }
  0x7d   :  { %14 = vst.msk [vmem:[#allocation0] sm:$0x1] %vm13_vm1, %v12_v3  }
  0x84   :  { %v17_v4 = vld [vmem:[#allocation0] sm:$0x1] }
  0x85   :  { %20 = vst [vmem:[%s40_s1] sm:$0x1] %v17_v4 }

// kernel: tile.93
= control target key start
LH: loop header
LB: loop body
LE: loop exit
PB: predicated region body
PF: predicated region fallthrough
CT: control target
= control target key end

     0   :  { %s22_s0 = inlined_call_operand.vmem [shape: f32[8], index: 0, kind: input, shape index: {}]   ;;  %s23_s1 = inlined_call_operand.vmem [shape: f32[2,8], index: 1, kind: output, shape index: {}]  }
   0x1   :  { %v4_v0 = vld [vmem:[%s22_s0] ss:$0 sm:$0xff] }
   0x2   :  { %5 = vst [vmem:[%s23_s1] sm:$0x3] %v4_v0 }

// kernel: tile.98
= control target key start
LH: loop header
LB: loop body
LE: loop exit
PB: predicated region body
PF: predicated region fallthrough
CT: control target
= control target key end

     0   :  { %vm7_vm0 = vcmask 64512   ;;  %vm13_vm1 = vcmask 130112   ;;  %s39_s0 = inlined_call_operand.vmem [shape: f32[2,8], index: 0, kind: input, shape index: {}]   ;;  %s40_s1 = inlined_call_operand.vmem [shape: f32[1,16], index: 1, kind: output, shape index: {}]  }
   0x1   :  { %v4_v0 = vld [vmem:[%s39_s0] sm:$0x3]  ;;  %s22_s0 = smov 8  }
   0x2   :  { %5 = vst [vmem:[#allocation1] sm:$0x3] %v4_v0 }
   0x9   :  { %v10_v1 = vld [vmem:[#allocation1 + $0x1] sm:$0x1]   ;;  %v6_v2 = vld [vmem:[#allocation1] sm:$0x1]  }
   0xa   :  { %11 = vrot.lane.b32.xlu0 %v10_v1, %s22_s0  ;;  %8 = vst.msk [vmem:[#allocation0] sm:$0x1] %vm7_vm0, %v6_v2  }
  0x7c   :  { %v12_v3 = vpop.permute.xlu0 %11  }
  0x7d   :  { %14 = vst.msk [vmem:[#allocation0] sm:$0x1] %vm13_vm1, %v12_v3  }
  0x84   :  { %v17_v4 = vld [vmem:[#allocation0] sm:$0x1] }
  0x85   :  { %20 = vst [vmem:[%s40_s1] sm:$0x1] %v17_v4 }

// kernel: conv_branch_nchw.8
= control target key start
LH: loop header
LB: loop body
LE: loop exit
PB: predicated region body
PF: predicated region fallthrough
CT: control target
= control target key end

     0   :  { %s405_s12 = smov 0   ;;  %s443_s0 = inlined_call_operand.vmem [shape: bf16[2,4,8], index: 0, kind: input, shape index: {}]   ;;  %s444_s1 = inlined_call_operand.vmem [shape: bf16[3,6,4], index: 1, kind: input, shape index: {}]   ;;  %s445_s2 = inlined_call_operand.vmem [shape: f32[2,4], index: 2, kind: input, shape index: {}]   ;;  %s446_s3 = inlined_call_operand.vmem [shape: bf16[2,2,4], index: 3, kind: output, shape index: {}]  }
   0x1 LB: > { %s352_s13 = sadd.s32 4294967295, %s382_s12   ;;  %p356_p0 = scmp.ge.s32.totalorder %s382_s12, 1  ;;  %s382_s12 = sphi %s405_s12, %s13_s12  }
   0x2   : > { %p136_p1 = scmp.lt.s32.totalorder %s382_s12, 3 }
   0x4   : > { %p137_p2 = pnand %p356_p0, %p136_p1 }
   0x5   : > { %p157_p3 = scmp.lt.s32.totalorder (!%p137_p2), %s352_s13, 1  ;;  %s384_s18 = smov (!%p137_p2), 126  }
   0x6   : > { %140 = sbr.rel (%p137_p2) target bundleno = 312 (0x138), region = 32 }
   0xb   : > { %s448_s13 = smov (!%p157_p3, %s352_s13), 1  ;;  %v222_v2 = vld [vmem:[%s444_s1] sm:$0x7]  ;;  %vm236_vm0 = vcmask 1042432   ;;  %v361_v3 = vld [vmem:[%s444_s1 + $0x8] sm:$0x7] }
   0xc   : > { %s357_s14 = sshll.u32 %s448_s13, 1  ;;  %v256_v4 = vsel %vm236_vm0, %v222_v2, 0  ;;  %v279_v5 = vsel %vm236_vm0, %v361_v3, 0  ;;  %vm175_vm1 = vcmask 1040384   ;;  %vm179_vm2 = vcmask 1041409   ;;  %s163_s4 = scalar_lea.vmem %s446_s3, %s448_s13 }
   0xd   : > { %s160_s17 = scalar_lea.vmem %s443_s0, %s357_s14  ;;  %265 = vmatpush.bf16.msra.mxu1 %v256_v4  ;;  %288 = vmatpush.bf16.msra.mxu2 %v279_v5  ;;  %v358_v10 = vld [vmem:[%s444_s1 + $0x4] sm:$0x7]  ;;  %vm187_vm3 = vcmask 41984   ;;  %vm210_vm4 = vcmask 1042434   ;;  %vm215_vm5 = vsmask.f32 256 }
   0xe   : > { %v165_v0 = vld [vmem:[%s160_s17] sm:$0x3]  ;;  %v238_v11 = vsel %vm236_vm0, %v358_v10, 0  ;;  %vm218_vm6 = vcmask 1041408   ;;  %vm219_vm7 = vsmask.f32 1280  ;;  %vm216_vm8 = vmand %vm175_vm1, %vm215_vm5 }
   0xf   : > { %v166_v1 = vunpack.c.l.bf16 %v165_v0  ;;  %247 = vmatpush.bf16.msra.mxu0 %v238_v11  ;;  %vm220_vm9 = vmand %vm218_vm6, %vm219_vm7  ;;  %vm232_vm10 = vcmask 48128   ;;  %v374_v49 = vld [vmem:[%s445_s2] ss:$0 sm:$0xff]  ;;  %v375_v53 = vld [vmem:[%s445_s2 + $0x1] ss:$0 sm:$0xff]  ;;  %vm303_vm11 = vcmask 24576  }
  0x11   : > { %168 = vrot.lane.b32.xlu0 %v166_v1, %s384_s18 }
  0x83   : > { %v169_v6 = vpop.permute.xlu0 %168 }
  0x84   : > { %v171_v7 = vmax.f32 %v166_v1, %v169_v6 }
  0x86   : > { %v172_v8 = vpack.c.bf16 %v171_v7, %v171_v7 }
  0x88   : > { %v174_v9 = vrot.slane %v172_v8, 3 }
  0x8a   : > { %v178_v12 = vsel %vm175_vm1, %v172_v8, %v174_v9  ;;  %v180_v13 = vsel %vm179_vm2, %v172_v8, %v174_v9 }
  0x8b   : > { %v182_v14 = vrot.slane %v180_v13, 1  ;;  %v185_v15 = vunpack.c.l.bf16 %v178_v12 }
  0x8d   : > { %v186_v16 = vunpack.c.l.bf16 %v182_v14  ;;  %v188_v17 = vsel %vm187_vm3, %v185_v15, -inf }
  0x8e   : > { %v189_v18 = vrot.slane %v188_v17, 4 }
  0x8f   : > { %v195_v19 = vsel %vm187_vm3, %v186_v16, -inf }
  0x90   : > { %v190_v20 = vmax.f32 %v188_v17, %v189_v18  ;;  %v196_v21 = vrot.slane %v195_v19, 4 }
  0x92   : > { %v191_v22 = vrot.slane %v190_v20, 2  ;;  %v197_v23 = vmax.f32 %v195_v19, %v196_v21 }
  0x94   : > { %v192_v24 = vmax.f32 %v190_v20, %v191_v22  ;;  %v198_v25 = vrot.slane %v197_v23, 2 }
  0x96   : > { %v193_v26 = vrot.slane %v192_v24, 1  ;;  %v199_v27 = vmax.f32 %v197_v23, %v198_v25 }
  0x98   : > { %v200_v28 = vrot.slane %v199_v27, 1  ;;  %v194_v29 = vmax.f32 %v192_v24, %v193_v26 }
  0x9a   : > { %v201_v30 = vmax.f32 %v199_v27, %v200_v28  ;;  %v202_v31 = vpack.c.bf16 %v194_v29, %v194_v29 }
  0x9c   : > { %v203_v32 = vpack.c.bf16 %v201_v30, %v201_v30  ;;  %v206_v33 = vperm.slane %v202_v31, 0 }
  0x9e   : > { %v207_v34 = vperm.slane %v203_v32, 0  ;;  %v208_v35 = vunpack.c.l.b16 %v206_v33 }
  0xa0   : > { %v209_v36 = vunpack.c.l.b16 %v207_v34 }
  0xa2   : > { %v211_v37 = vsel %vm210_vm4, %v209_v36, %v208_v35 }
  0xa3   : > { %v212_v38 = vpack.c.b16 %v211_v37, %v211_v37 }
  0xa5   : > { %v217_v39 = vsel %vm216_vm8, 0, %v212_v38 }
  0xa6   : > { %v221_v40 = vsel %vm220_vm9, %v217_v39, 0 }
  0xa7   : > { %360 = vmatmul.msk.bf16.vlgmr.msra.gmra.mxu1 %vm232_vm10, %v221_v40  ;;  %v274_v41 = vrot.slane %v221_v40, 1  ;;  %v228_v42 = vshll.u32 %v221_v40, 16  ;;  %v226_v43 = vshrl.u32 %v221_v40, 16 }
  0xa9   : > { %362 = vmatmul.msk.bf16.vlgmr.msra.gmra.mxu2 %vm232_vm10, %v274_v41  ;;  %v230_v44 = vrot.slane %v228_v42, 1 }
  0xab   : > { %v231_v45 = vor.u32 %v230_v44, %v226_v43 }
  0xad   : > { %359 = vmatmul.msk.bf16.vlgmr.msra.gmra.mxu0 %vm232_vm10, %v231_v45 }
 0x124   : > { %v267_v46 = vpop.f32.mrf.mxu1 }
 0x12a   : > { %v249_v47 = vpop.f32.mrf.mxu0 }
 0x12b   : > { %v268_v48 = vadd.f32 %v267_v46, %v249_v47 }
 0x12c   : > { %v269_v50 = vpop.f32.mrf.mxu1  ;;  %v290_v51 = vpop.f32.mrf.mxu2 }
 0x12d   : > { %v294_v52 = vadd.f32 %v290_v51, %v268_v48 }
 0x12f   : > { %v297_v54 = vmul.f32 %v374_v49, %v294_v52 }
 0x131   : > { %v300_v55 = vadd.f32 %v375_v53, %v297_v54 }
 0x132   : > { %v251_v56 = vpop.f32.mrf.mxu0 }
 0x133   : > { %v301_v57 = vmax.f32 %v300_v55, 0.0 }
 0x134   : > { %v292_v58 = vpop.f32.mrf.mxu2 }
 0x135   : > { %v302_v59 = vpack.c.bf16 %v301_v57, %v301_v57 }
 0x137   : > { %304 = vst.msk [vmem:[%s163_s4] sm:$0x1] %vm303_vm11, %v302_v59 }
 0x138 PF: > { %s13_s12 = sadd.s32 1, %s382_s12  }
 0x139   : > { %p10_p4 = scmp.ge.s32.totalorder %s13_s12, 4  }
 0x13b   :  { %12 = sbr.rel (!%p10_p4) target bundleno = 1 (0x1), region = 64 }

// kernel: tile.103
= control target key start
LH: loop header
LB: loop body
LE: loop exit
PB: predicated region body
PF: predicated region fallthrough
CT: control target
= control target key end

     0   :  { %s22_s0 = inlined_call_operand.vmem [shape: f32[8], index: 0, kind: input, shape index: {}]   ;;  %s23_s1 = inlined_call_operand.vmem [shape: f32[4,8], index: 1, kind: output, shape index: {}]  }
   0x1   :  { %v4_v0 = vld [vmem:[%s22_s0] ss:$0 sm:$0xff] }
   0x2   :  { %5 = vst [vmem:[%s23_s1] sm:$0xf] %v4_v0 }

// kernel: tile.108
= control target key start
LH: loop header
LB: loop body
LE: loop exit
PB: predicated region body
PF: predicated region fallthrough
CT: control target
= control target key end

     0   :  { %s37_s8 = smov 8   ;;  %s38_s9 = smov 16   ;;  %vm7_vm0 = vcmask 64512   ;;  %vm13_vm1 = vcmask 261312   ;;  %vm19_vm2 = vcmask 195712   ;;  %vm25_vm3 = vcmask 130112   ;;  %s55_s0 = inlined_call_operand.vmem [shape: f32[4,8], index: 0, kind: input, shape index: {}]   ;;  %s56_s1 = inlined_call_operand.vmem [shape: f32[1,32], index: 1, kind: output, shape index: {}]  }
   0x1   :  { %v4_v0 = vld [vmem:[%s55_s0] sm:$0xf]  ;;  %s36_s0 = smov 24  }
   0x2   :  { %5 = vst [vmem:[#allocation1] sm:$0xf] %v4_v0 }
   0x9   :  { %v10_v1 = vld [vmem:[#allocation1 + $0x3] sm:$0x1]   ;;  %v22_v2 = vld [vmem:[#allocation1 + $0x1] sm:$0x1]   ;;  %v16_v3 = vld [vmem:[#allocation1 + $0x2] sm:$0x1]  }
   0xa   :  { %11 = vrot.lane.b32.xlu0 %v10_v1, %s36_s0  ;;  %23 = vrot.lane.b32.xlu1 %v22_v2, %s37_s8  ;;  %v6_v4 = vld [vmem:[#allocation1] sm:$0x1]  }
   0xb   :  { %8 = vst.msk [vmem:[#allocation0] sm:$0x1] %vm7_vm0, %v6_v4  }
  0x12   :  { %17 = vrot.lane.b32.xlu0 %v16_v3, %s38_s9 }
  0x7c   :  { %v12_v5 = vpop.permute.xlu0 %11   ;;  %v24_v6 = vpop.permute.xlu1 %23  }
  0x7d   :  { %14 = vst.msk [vmem:[#allocation0] sm:$0x1] %vm13_vm1, %v12_v5  }
  0x84   :  { %v18_v7 = vpop.permute.xlu0 %17  }
  0x85   :  { %20 = vst.msk [vmem:[#allocation0] sm:$0x1] %vm19_vm2, %v18_v7  }
  0x86   :  { %26 = vst.msk [vmem:[#allocation0] sm:$0x1] %vm25_vm3, %v24_v6  }
  0x8d   :  { %v29_v8 = vld [vmem:[#allocation0] sm:$0x1] }
  0x8e   :  { %32 = vst [vmem:[%s56_s1] sm:$0x1] %v29_v8 }

// kernel: conv_branch_nchw.9
= control target key start
LH: loop header
LB: loop body
LE: loop exit
PB: predicated region body
PF: predicated region fallthrough
CT: control target
= control target key end

     0   :  { %s487_s18 = smov 0   ;;  %s537_s0 = inlined_call_operand.vmem [shape: bf16[2,2,4], index: 0, kind: input, shape index: {}]   ;;  %s538_s1 = inlined_call_operand.vmem [shape: bf16[3,4,16], index: 1, kind: input, shape index: {}]   ;;  %s539_s2 = inlined_call_operand.vmem [shape: f32[2,16], index: 2, kind: input, shape index: {}]   ;;  %s540_s3 = inlined_call_operand.vmem [shape: f32[16,32], index: 3, kind: input, shape index: {}]   ;;  %s541_s4 = inlined_call_operand.vmem [shape: f32[4,2], index: 4, kind: input, shape index: {}]   ;;  %s542_s5 = inlined_call_operand.vmem [shape: f32[2,4,32], index: 5, kind: output, shape index: {}]  }
   0x1 LB: > { %s423_s19 = sadd.s32 4294967295, %s455_s18   ;;  %p427_p0 = scmp.ge.s32.totalorder %s455_s18, 1  ;;  %s455_s18 = sphi %s487_s18, %s15_s18  }
   0x2   : > { %p185_p1 = scmp.lt.s32.totalorder %s455_s18, 3 }
   0x4   : > { %p186_p2 = pnand %p427_p0, %p185_p1 }
   0x5   : > { %p210_p3 = scmp.lt.s32.totalorder (!%p186_p2), %s423_s19, 1 }
   0x6   : > { %189 = sbr.rel (%p186_p2) target bundleno = 438 (0x1b6), region = 40 }
   0xb   : > { %vm233_vm0 = vcmask 1041408   ;;  %v237_v0 = vld [vmem:[%s538_s1] sm:$0x3]  ;;  %v432_v1 = vld [vmem:[%s538_s1 + $0x4] sm:$0x3]  ;;  %s544_s19 = smov (!%p210_p3, %s423_s19), 1 }
   0xc   : > { %v271_v2 = vsel %vm233_vm0, %v237_v0, 0  ;;  %v294_v3 = vsel %vm233_vm0, %v432_v1, 0  ;;  %v429_v4 = vld [vmem:[%s538_s1 + $0x2] sm:$0x3]  ;;  %s212_s28 = scalar_lea.vmem %s537_s0, %s544_s19  ;;  %vm229_vm1 = vcmask 1040384   ;;  %vm247_vm6 = vcmask 31744  }
   0xd   : > { %280 = vmatpush.bf16.msra.mxu1 %v271_v2  ;;  %303 = vmatpush.bf16.msra.mxu2 %v294_v3  ;;  %v253_v5 = vsel %vm233_vm0, %v429_v4, 0  ;;  %v218_v6 = vld [vmem:[%s212_s28] sm:$0x1]  ;;  %vm230_vm2 = vsmask.f32 256  ;;  %v318_v19 = vld [vmem:[%s540_s3 + $0x8] sm:$0xff] }
   0xe   : > { %262 = vmatpush.bf16.msra.mxu0 %v253_v5  ;;  %220 = vst [vmem:[#allocation1] ss:$9 sm:$0xff] %v218_v6  ;;  %vm234_vm3 = vsmask.f32 1280  ;;  %vm231_vm4 = vmand %vm229_vm1, %vm230_vm2  ;;  %337 = vmatpush.msra.mxu3 %v318_v19  ;;  %v317_v20 = vld [vmem:[%s540_s3] sm:$0xff]  ;;  %vm319_vm7 = vcmask 130048  }
   0xf   : > { %vm235_vm5 = vmand %vm233_vm0, %vm234_vm3  ;;  %v447_v24 = vld [vmem:[%s539_s2] ss:$0 sm:$0xff]  ;;  %v448_v28 = vld [vmem:[%s539_s2 + $0x1] ss:$0 sm:$0xff]  ;;  %vm344_vm8 = vcmask 15360   ;;  %s428_s14 = sshll.u32 %s544_s19, 2 }
  0x10   : > { %338 = vmatpush.msra.mxu3 %v317_v20  ;;  %v343_v34 = vld [vmem:[%s541_s4] sm:$0xf]  ;;  %s216_s17 = scalar_lea.vmem %s542_s5, %s428_s14  ;;  %vm371_vm9 = vcmask 257024  }
  0x15   : > { %v221_v7 = vld [vmem:[#allocation1] sm:$0xff] }
  0x16   : > { %v222_v8 = vshrl.u32 %v221_v7, 16  ;;  %v225_v9 = vshll.u32 %v221_v7, 16 }
  0x18   : > { %v224_v10 = vrot.slane %v222_v8, 7 }
  0x1a   : > { %v227_v11 = vor.u32 %v225_v9, %v224_v10 }
  0x1c   : > { %v232_v12 = vsel %vm231_vm4, 0, %v227_v11 }
  0x1d   : > { %v236_v13 = vsel %vm235_vm5, %v232_v12, 0 }
  0x1e   : > { %431 = vmatmul.msk.bf16.vlgmr.msra.gmra.mxu1 %vm247_vm6, %v236_v13  ;;  %v289_v14 = vrot.slane %v236_v13, 1  ;;  %v241_v15 = vshrl.u32 %v236_v13, 16  ;;  %v243_v16 = vshll.u32 %v236_v13, 16 }
  0x20   : > { %433 = vmatmul.msk.bf16.vlgmr.msra.gmra.mxu2 %vm247_vm6, %v289_v14  ;;  %v245_v17 = vrot.slane %v243_v16, 1 }
  0x22   : > { %v246_v18 = vor.u32 %v245_v17, %v241_v15 }
  0x24   : > { %430 = vmatmul.msk.bf16.vlgmr.msra.gmra.mxu0 %vm247_vm6, %v246_v18 }
  0x9b   : > { %v282_v21 = vpop.f32.mrf.mxu1 }
  0xa1   : > { %v264_v22 = vpop.f32.mrf.mxu0 }
  0xa2   : > { %v283_v23 = vadd.f32 %v282_v21, %v264_v22 }
  0xa3   : > { %v284_v25 = vpop.f32.mrf.mxu1  ;;  %v305_v26 = vpop.f32.mrf.mxu2 }
  0xa4   : > { %v309_v27 = vadd.f32 %v305_v26, %v283_v23 }
  0xa6   : > { %v312_v29 = vmul.f32 %v447_v24, %v309_v27 }
  0xa8   : > { %v315_v30 = vadd.f32 %v448_v28, %v312_v29 }
  0xa9   : > { %v266_v31 = vpop.f32.mrf.mxu0 }
  0xaa   : > { %v316_v32 = vmax.f32 %v315_v30, 0.0 }
  0xab   : > { %v307_v33 = vpop.f32.mrf.mxu2 }
  0xac   : > { %434 = vmatmul.msk.f32.vlgmr.msra.gmra.mxu3 %vm319_vm7, %v316_v32 }
 0x12f   : > { %v340_v35 = vpop.f32.mrf.mxu3 }
 0x130   : > { %435 = vmatpush.msk.msrb.mxu3 %vm233_vm0, %v340_v35 }
 0x131   : > { %436 = vmatmul.msk.f32.vlgmr.msrb.gmra.mxu3 %vm344_vm8, %v343_v34 }
 0x1b4   : > { %v368_v36 = vpop.f32.mrf.mxu3 }
 0x1b5   : > { %372 = vst.msk [vmem:[%s216_s17] sm:$0xf] %vm371_vm9, %v368_v36 }
 0x1b6 PF: > { %s15_s18 = sadd.s32 1, %s455_s18  }
 0x1b7   : > { %p12_p4 = scmp.ge.s32.totalorder %s15_s18, 4  }
 0x1b9   :  { %14 = sbr.rel (!%p12_p4) target bundleno = 1 (0x1), region = 72 }

// kernel: tile.113
= control target key start
LH: loop header
LB: loop body
LE: loop exit
PB: predicated region body
PF: predicated region fallthrough
CT: control target
= control target key end

     0   :  { %s22_s0 = inlined_call_operand.vmem [shape: f32[8], index: 0, kind: input, shape index: {}]   ;;  %s23_s1 = inlined_call_operand.vmem [shape: f32[8,8], index: 1, kind: output, shape index: {}]  }
   0x1   :  { %v4_v0 = vld [vmem:[%s22_s0] ss:$0 sm:$0xff] }
   0x2   :  { %5 = vst [vmem:[%s23_s1] sm:$0xff] %v4_v0 }

// kernel: tile.118
= control target key start
LH: loop header
LB: loop body
LE: loop exit
PB: predicated region body
PF: predicated region fallthrough
CT: control target
= control target key end

     0   :  { %s67_s10 = smov 56   ;;  %s68_s11 = smov 40   ;;  %vm3_vm0 = vcmask 64512   ;;  %vm9_vm1 = vcmask 523712   ;;  %vm15_vm2 = vcmask 458112   ;;  %vm21_vm3 = vcmask 392512   ;;  %s111_s0 = inlined_call_operand.vmem [shape: f32[8,8], index: 0, kind: input, shape index: {}]   ;;  %s112_s1 = inlined_call_operand.vmem [shape: f32[1,64], index: 1, kind: output, shape index: {}]  }
   0x1   :  { %v53_v0 = vld [vmem:[%s111_s0 + $0x7] sm:$0x1]   ;;  %v55_v1 = vld [vmem:[%s111_s0 + $0x5] sm:$0x1]   ;;  %v57_v2 = vld [vmem:[%s111_s0 + $0x3] sm:$0x1]  }
   0x2   :  { %7 = vrot.lane.b32.xlu0 %v53_v0, %s67_s10  ;;  %19 = vrot.lane.b32.xlu1 %v55_v1, %s68_s11  ;;  %s69_s14 = smov 24   ;;  %v54_v3 = vld [vmem:[%s111_s0 + $0x6] sm:$0x1]   ;;  %v56_v4 = vld [vmem:[%s111_s0 + $0x4] sm:$0x1]   ;;  %s70_s21 = smov 48  }
   0x3   :  { %31 = vrot.lane.b32.xlu2 %v57_v2, %s69_s14  ;;  %v58_v5 = vld [vmem:[%s111_s0 + $0x2] sm:$0x1]   ;;  %s71_s22 = smov 32   ;;  %s72_s23 = smov 16   ;;  %v59_v6 = vld [vmem:[%s111_s0 + $0x1] sm:$0x1]  }
   0x4   :  { %s73_s26 = smov 8   ;;  %v2_v7 = vld [vmem:[%s111_s0] sm:$0x1]   ;;  %vm27_vm4 = vcmask 326912   ;;  %vm33_vm5 = vcmask 261312   ;;  %vm39_vm6 = vcmask 195712  }
   0x5   :  { %4 = vst.msk [vmem:[#allocation0] sm:$0x1] %vm3_vm0, %v2_v7   ;;  %vm45_vm7 = vcmask 130112  }
   0xa   :  { %13 = vrot.lane.b32.xlu0 %v54_v3, %s70_s21  ;;  %25 = vrot.lane.b32.xlu1 %v56_v4, %s71_s22 }
   0xb   :  { %37 = vrot.lane.b32.xlu2 %v58_v5, %s72_s23 }
  0x12   :  { %43 = vrot.lane.b32.xlu0 %v59_v6, %s73_s26 }
  0x5d   :  { %v32_v8 = vpop.permute.xlu2 %31  }
  0x65   :  { %v38_v9 = vpop.permute.xlu2 %37  }
  0x74   :  { %v8_v10 = vpop.permute.xlu0 %7   ;;  %v20_v11 = vpop.permute.xlu1 %19  }
  0x75   :  { %10 = vst.msk [vmem:[#allocation0] sm:$0x1] %vm9_vm1, %v8_v10  }
  0x7c   :  { %v14_v12 = vpop.permute.xlu0 %13   ;;  %v26_v13 = vpop.permute.xlu1 %25  }
  0x7d   :  { %16 = vst.msk [vmem:[#allocation0] sm:$0x1] %vm15_vm2, %v14_v12  }
  0x7e   :  { %22 = vst.msk [vmem:[#allocation0] sm:$0x1] %vm21_vm3, %v20_v11  }
  0x7f   :  { %28 = vst.msk [vmem:[#allocation0] sm:$0x1] %vm27_vm4, %v26_v13  }
  0x80   :  { %34 = vst.msk [vmem:[#allocation0] sm:$0x1] %vm33_vm5, %v32_v8  }
  0x81   :  { %40 = vst.msk [vmem:[#allocation0] sm:$0x1] %vm39_vm6, %v38_v9  }
  0x84   :  { %v44_v14 = vpop.permute.xlu0 %43  }
  0x85   :  { %46 = vst.msk [vmem:[#allocation0] sm:$0x1] %vm45_vm7, %v44_v14  }
  0x8c   :  { %v49_v15 = vld [vmem:[#allocation0] sm:$0x1] }
  0x8d   :  { %52 = vst [vmem:[%s112_s1] sm:$0x1] %v49_v15 }

// kernel: conv_branch_nchw.10
= control target key start
LH: loop header
LB: loop body
LE: loop exit
PB: predicated region body
PF: predicated region fallthrough
CT: control target
= control target key end

     0   :  { %s604_s21 = smov 0   ;;  %s671_s0 = inlined_call_operand.vmem [shape: bf16[2,4,8], index: 0, kind: input, shape index: {}]   ;;  %s672_s1 = inlined_call_operand.vmem [shape: bf16[5,8,32], index: 1, kind: input, shape index: {}]   ;;  %s673_s2 = inlined_call_operand.vmem [shape: f32[2,32], index: 2, kind: input, shape index: {}]   ;;  %s674_s3 = inlined_call_operand.vmem [shape: f32[32,64], index: 3, kind: input, shape index: {}]   ;;  %s675_s4 = inlined_call_operand.vmem [shape: f32[8,4], index: 4, kind: input, shape index: {}]   ;;  %s676_s5 = inlined_call_operand.vmem [shape: f32[2,4,32], index: 5, kind: input, shape index: {}]   ;;  %s677_s6 = inlined_call_operand.vmem [shape: f32[2,8,64], index: 6, kind: output, shape index: {}]  }
   0x1 LB: > { %s529_s22 = sadd.s32 4294967295, %s567_s21   ;;  %p533_p0 = scmp.ge.s32.totalorder %s567_s21, 1  ;;  %s567_s21 = sphi %s604_s21, %s16_s21  }
   0x2   : > { %p220_p1 = scmp.lt.s32.totalorder %s567_s21, 3 }
   0x4   : > { %p221_p2 = pnand %p533_p0, %p220_p1 }
   0x5   : > { %p252_p3 = scmp.lt.s32.totalorder (!%p221_p2), %s529_s22, 1 }
   0x6   : > { %224 = sbr.rel (%p221_p2) target bundleno = 446 (0x1be), region = 44 }
   0xb   : > { %vm290_vm0 = vcmask 1043456   ;;  %v540_v0 = vld [vmem:[%s672_s1 + $0x8] sm:$0xf]  ;;  %v537_v2 = vld [vmem:[%s672_s1 + $0x4] sm:$0xf]  ;;  %s679_s22 = smov (!%p252_p3, %s529_s22), 1 }
   0xc   : > { %v333_v1 = vsel %vm290_vm0, %v540_v0, 0  ;;  %v277_v3 = vld [vmem:[%s672_s1] sm:$0xf]  ;;  %v292_v4 = vsel %vm290_vm0, %v537_v2, 0  ;;  %v542_v6 = vld [vmem:[%s672_s1 + $0xc] sm:$0xf] }
   0xd   : > { %342 = vmatpush.bf16.msra.mxu2 %v333_v1  ;;  %v310_v5 = vsel %vm290_vm0, %v277_v3, 0  ;;  %301 = vmatpush.bf16.msra.mxu0 %v292_v4  ;;  %v358_v7 = vsel %vm290_vm0, %v542_v6, 0  ;;  %v544_v8 = vld [vmem:[%s672_s1 + $0x10] sm:$0xf]  ;;  %s534_s9 = sshll.u32 %s679_s22, 1  ;;  %vm271_vm1 = vcmask 1040384  }
   0xe   : > { %319 = vmatpush.bf16.msra.mxu1 %v310_v5  ;;  %367 = vmatpush.bf16.msra.mxu3 %v358_v7  ;;  %v381_v9 = vsel %vm290_vm0, %v544_v8, 0  ;;  %s255_s12 = scalar_lea.vmem %s671_s0, %s534_s9  ;;  %vm275_vm2 = vcmask 1042432   ;;  %vm286_vm3 = vcmask 64512   ;;  %v409_v24 = vld [vmem:[%s674_s3 + $0x18] sm:$0xff]  ;;  %v408_v25 = vld [vmem:[%s674_s3 + $0x10] sm:$0xff]  ;;  %v407_v26 = vld [vmem:[%s674_s3 + $0x8] sm:$0xff] }
   0xf   : > { %v265_v10 = vld [vmem:[%s255_s12] sm:$0x3]  ;;  %s535_s25 = sshll.u32 %s679_s22, 2  ;;  %vm410_vm4 = vcmask 261120   ;;  %vm435_vm5 = vcmask 31744   ;;  %s536_s9 = sshll.u32 %s679_s22, 3 }
  0x10   : > { %267 = vst [vmem:[#allocation1] ss:$4 sm:$0xff] %v265_v10  ;;  %v406_v27 = vld [vmem:[%s674_s3] sm:$0xff]  ;;  %s259_s30 = scalar_lea.vmem %s676_s5, %s535_s25  ;;  %s263_s12 = scalar_lea.vmem %s677_s6, %s536_s9  ;;  %vm462_vm6 = vcmask 523264  }
  0x11   : > { %390 = vmatpush.bf16.msrb.mxu0 %v381_v9  ;;  %v559_v39 = vld [vmem:[%s673_s2] ss:$0 sm:$0xff]  ;;  %v560_v42 = vld [vmem:[%s673_s2 + $0x1] ss:$0 sm:$0xff] }
  0x12   : > { %426 = vmatpush.msrb.mxu1 %v409_v24  ;;  %v404_v45 = vld [vmem:[%s259_s30] sm:$0xf] }
  0x13   : > { %v434_v49 = vld [vmem:[%s675_s4] sm:$0xff] }
  0x14   : > { %427 = vmatpush.msrb.mxu1 %v408_v25 }
  0x16   : > { %428 = vmatpush.msrb.mxu1 %v407_v26 }
  0x17   : > { %v268_v11 = vld.sshfl [vmem:[#allocation1] sm:$0xff pattern:$0x73625140] }
  0x18   : > { %v270_v12 = vrot.slane %v268_v11, 7  ;;  %429 = vmatpush.msrb.mxu1 %v406_v27 }
  0x1a   : > { %v274_v13 = vsel %vm271_vm1, 0, %v270_v12 }
  0x1b   : > { %v276_v14 = vsel %vm275_vm2, %v274_v13, 0 }
  0x1c   : > { %v328_v15 = vrot.slane %v276_v14, 1  ;;  %v280_v16 = vshrl.u32 %v276_v14, 16  ;;  %v282_v17 = vshll.u32 %v276_v14, 16  ;;  %539 = vmatmul.msk.bf16.vlgmr.msra.gmra.mxu1 %vm286_vm3, %v276_v14  ;;  %v376_v23 = vrot.slane %v276_v14, 2 }
  0x1e   : > { %541 = vmatmul.msk.bf16.vlgmr.msra.gmra.mxu2 %vm286_vm3, %v328_v15  ;;  %v284_v18 = vrot.slane %v282_v17, 1  ;;  %v351_v19 = vrot.slane %v280_v16, 1  ;;  %v352_v20 = vrot.slane %v282_v17, 2 }
  0x20   : > { %v285_v21 = vor.u32 %v284_v18, %v280_v16  ;;  %v353_v22 = vor.u32 %v352_v20, %v351_v19 }
  0x22   : > { %538 = vmatmul.msk.bf16.vlgmr.msra.gmra.mxu0 %vm286_vm3, %v285_v21  ;;  %543 = vmatmul.msk.bf16.vlgmr.msra.gmra.mxu3 %vm286_vm3, %v353_v22 }
  0x32   : > { %545 = vmatmul.msk.bf16.vlgmr.msrb.gmra.mxu0 %vm286_vm3, %v376_v23 }
  0x99   : > { %v321_v28 = vpop.f32.mrf.mxu1 }
  0x9f   : > { %v303_v29 = vpop.f32.mrf.mxu0 }
  0xa0   : > { %v322_v34 = vadd.f32 %v321_v28, %v303_v29 }
  0xa1   : > { %v344_v30 = vpop.f32.mrf.mxu2  ;;  %v323_v31 = vpop.f32.mrf.mxu1 }
  0xa2   : > { %v348_v36 = vadd.f32 %v344_v30, %v322_v34 }
  0xa5   : > { %v369_v32 = vpop.f32.mrf.mxu3 }
  0xa6   : > { %v373_v38 = vadd.f32 %v369_v32, %v348_v36 }
  0xa7   : > { %v305_v33 = vpop.f32.mrf.mxu0 }
  0xa9   : > { %v346_v35 = vpop.f32.mrf.mxu2 }
  0xad   : > { %v371_v37 = vpop.f32.mrf.mxu3 }
  0xaf   : > { %v392_v40 = vpop.f32.mrf.mxu0 }
  0xb0   : > { %v396_v41 = vadd.f32 %v392_v40, %v373_v38 }
  0xb2   : > { %v399_v43 = vmul.f32 %v559_v39, %v396_v41 }
  0xb4   : > { %v402_v44 = vadd.f32 %v560_v42, %v399_v43 }
  0xb6   : > { %v403_v46 = vmax.f32 %v402_v44, 0.0 }
  0xb7   : > { %v394_v47 = vpop.f32.mrf.mxu0 }
  0xb8   : > { %v405_v48 = vadd.f32 %v404_v45, %v403_v46 }
  0xba   : > { %546 = vmatmul.msk.f32.vlgmr.msrb.gmra.mxu1 %vm410_vm4, %v405_v48 }
 0x137   : > { %v431_v50 = vpop.f32.mrf.mxu1 }
 0x138   : > { %547 = vmatpush.msk.msrb.mxu2 %vm290_vm0, %v431_v50 }
 0x139   : > { %548 = vmatmul.msk.f32.vlgmr.msrb.gmra.mxu2 %vm435_vm5, %v434_v49 }
 0x1bc   : > { %v459_v51 = vpop.f32.mrf.mxu2 }
 0x1bd   : > { %463 = vst.msk [vmem:[%s263_s12] sm:$0xff] %vm462_vm6, %v459_v51 }
 0x1be PF: > { %s16_s21 = sadd.s32 1, %s567_s21  }
 0x1bf   : > { %p13_p4 = scmp.ge.s32.totalorder %s16_s21, 4  }
 0x1c1   :  { %15 = sbr.rel (!%p13_p4) target bundleno = 1 (0x1), region = 81 }

// kernel: conv_branch_nchw.11
= control target key start
LH: loop header
LB: loop body
LE: loop exit
PB: predicated region body
PF: predicated region fallthrough
CT: control target
= control target key end

     0   :  { %s748_s21 = smov 0   ;;  %s837_s0 = inlined_call_operand.vmem [shape: bf16[2,8,16], index: 0, kind: input, shape index: {}]   ;;  %s838_s1 = inlined_call_operand.vmem [shape: bf16[7,16,64], index: 1, kind: input, shape index: {}]   ;;  %s839_s2 = inlined_call_operand.vmem [shape: f32[2,64], index: 2, kind: input, shape index: {}]   ;;  %s840_s3 = inlined_call_operand.vmem [shape: f32[64,128], index: 3, kind: input, shape index: {}]   ;;  %s841_s4 = inlined_call_operand.vmem [shape: f32[16,8], index: 4, kind: input, shape index: {}]   ;;  %s842_s5 = inlined_call_operand.vmem [shape: f32[2,8,64], index: 5, kind: input, shape index: {}]   ;;  %s843_s6 = inlined_call_operand.vmem [shape: f32[2,16,128], index: 6, kind: output, shape index: {}]  }
   0x1 LB: > { %s626_s22 = sadd.s32 4294967295, %s711_s21   ;;  %p630_p0 = scmp.ge.s32.totalorder %s711_s21, 1  ;;  %s711_s21 = sphi %s748_s21, %s16_s21  }
   0x2   : > { %p220_p1 = scmp.lt.s32.totalorder %s711_s21, 3 }
   0x4   : > { %p221_p2 = pnand %p630_p0, %p220_p1 }
   0x5   : > { %p253_p3 = scmp.lt.s32.totalorder (!%p221_p2), %s626_s22, 1 }
   0x6   : > { %224 = sbr.rel (%p221_p2) target bundleno = 463 (0x1cf), region = 44 }
   0xb   : > { %v688_v0 = vld [vmem:[%s838_s1] sm:$0xff]  ;;  %v690_v1 = vld [vmem:[%s838_s1 + $0x10] sm:$0xff]  ;;  %v689_v2 = vld [vmem:[%s838_s1 + $0x8] sm:$0xff]  ;;  %s845_s22 = smov (!%p253_p3, %s626_s22), 1  ;;  %vm280_vm0 = vcmask 1041408   ;;  %vm284_vm2 = vcmask 1045504  }
   0xc   : > { %v691_v3 = vld [vmem:[%s838_s1 + $0x18] sm:$0xff]  ;;  %338 = vmatpush.bf16.msra.mxu1 %v688_v0  ;;  %365 = vmatpush.bf16.msra.mxu2 %v690_v1  ;;  %v694_v4 = vld [vmem:[%s838_s1 + $0x30] sm:$0xff]  ;;  %v692_v5 = vld [vmem:[%s838_s1 + $0x20] sm:$0xff]  ;;  %s631_s13 = sshll.u32 %s845_s22, 2  ;;  %vm281_vm1 = vsmask.f32 1280 }
   0xd   : > { %317 = vmatpush.bf16.msra.mxu0 %v689_v2  ;;  %394 = vmatpush.bf16.msra.mxu3 %v691_v3  ;;  %v693_v6 = vld [vmem:[%s838_s1 + $0x28] sm:$0xff]  ;;  %s256_s16 = scalar_lea.vmem %s837_s0, %s631_s13  ;;  %vm285_vm3 = vsmask.f32 5376  ;;  %vm282_vm4 = vmand %vm280_vm0, %vm281_vm1  ;;  %vm306_vm6 = vcmask 130048   ;;  %v500_v30 = vld [vmem:[%s840_s3 + $0x38] sm:$0xff]  ;;  %s632_s13 = sshll.u32 %s845_s22, 3 }
   0xe   : > { %v267_v7 = vld [vmem:[%s256_s16] sm:$0xf]  ;;  %vm286_vm5 = vmand %vm284_vm2, %vm285_vm3  ;;  %v499_v31 = vld [vmem:[%s840_s3 + $0x30] sm:$0xff]  ;;  %s260_s18 = scalar_lea.vmem %s842_s5, %s632_s13  ;;  %vm501_vm7 = vcmask 523264   ;;  %vm527_vm8 = vcmask 64512   ;;  %s687_s25 = sshll.u32 %s845_s22, 4 }
   0xf   : > { %v269_v8 = vunpack.c.l.b16 %v267_v7  ;;  %v498_v32 = vld [vmem:[%s840_s3 + $0x28] sm:$0xff]  ;;  %v497_v33 = vld [vmem:[%s840_s3 + $0x20] sm:$0xff]  ;;  %v496_v34 = vld [vmem:[%s840_s3 + $0x18] sm:$0xff]  ;;  %s265_s28 = scalar_lea.vmem %s843_s6, %s687_s25 }
  0x10   : > { %477 = vmatpush.bf16.msrb.mxu2 %v694_v4  ;;  %450 = vmatpush.bf16.msrb.mxu1 %v693_v6  ;;  %v495_v35 = vld [vmem:[%s840_s3 + $0x10] sm:$0xff]  ;;  %v494_v37 = vld [vmem:[%s840_s3 + $0x8] sm:$0xff]  ;;  %v493_v38 = vld [vmem:[%s840_s3] sm:$0xff] }
  0x11   : > { %421 = vmatpush.bf16.msrb.mxu0 %v692_v5  ;;  %v270_v9 = vpack.c.b16 %v269_v8, %v269_v8  ;;  %513 = vmatpush.msrb.mxu3 %v500_v30  ;;  %v703_v55 = vld [vmem:[%s839_s2] ss:$0 sm:$0xff]  ;;  %v704_v57 = vld [vmem:[%s839_s2 + $0x1] ss:$0 sm:$0xff]  ;;  %v526_v3 = vld [vmem:[%s841_s4 + $0x8] sm:$0xff] }
  0x12   : > { %v491_v61 = vld [vmem:[%s260_s18] sm:$0xff] }
  0x13   : > { %v272_v10 = vshrl.u32 %v270_v9, 16  ;;  %v275_v11 = vshll.u32 %v270_v9, 16  ;;  %514 = vmatpush.msrb.mxu3 %v499_v31  ;;  %v525_v1 = vld [vmem:[%s841_s4] sm:$0xff] }
  0x15   : > { %v274_v12 = vrot.slane %v272_v10, 6  ;;  %v277_v13 = vrot.slane %v275_v11, 7  ;;  %515 = vmatpush.msrb.mxu3 %v498_v32 }
  0x17   : > { %v278_v14 = vor.u32 %v277_v13, %v274_v12  ;;  %516 = vmatpush.msrb.mxu3 %v497_v33 }
  0x19   : > { %v283_v15 = vsel %vm282_vm4, 0, %v278_v14  ;;  %517 = vmatpush.msrb.mxu3 %v496_v34 }
  0x1a   : > { %v287_v16 = vsel %vm286_vm5, %v283_v15, 0 }
  0x1b   : > { %646 = vmatmul.msk.bf16.vlgmr.msra.gmra.mxu1 %vm306_vm6, %v287_v16  ;;  %v348_v17 = vrot.slane %v287_v16, 1  ;;  %v294_v18 = vshrl.u32 %v287_v16, 16  ;;  %v296_v19 = vshll.u32 %v287_v16, 16  ;;  %v460_v28 = vrot.slane %v287_v16, 3  ;;  %518 = vmatpush.msrb.mxu3 %v495_v35 }
  0x1c   : > { %v404_v29 = vrot.slane %v287_v16, 2 }
  0x1d   : > { %653 = vmatmul.msk.bf16.vlgmr.msra.gmra.mxu2 %vm306_vm6, %v348_v17  ;;  %v298_v20 = vrot.slane %v296_v19, 1  ;;  %v375_v21 = vrot.slane %v294_v18, 1  ;;  %v376_v22 = vrot.slane %v296_v19, 2  ;;  %v431_v25 = vrot.slane %v294_v18, 2  ;;  %519 = vmatpush.msrb.mxu3 %v494_v37 }
  0x1e   : > { %v432_v26 = vrot.slane %v296_v19, 3 }
  0x1f   : > { %v299_v23 = vor.u32 %v298_v20, %v294_v18  ;;  %v377_v24 = vor.u32 %v376_v22, %v375_v21  ;;  %520 = vmatpush.msrb.mxu3 %v493_v38 }
  0x20   : > { %v433_v27 = vor.u32 %v432_v26, %v431_v25 }
  0x21   : > { %641 = vmatmul.msk.bf16.vlgmr.msra.gmra.mxu0 %vm306_vm6, %v299_v23  ;;  %660 = vmatmul.msk.bf16.vlgmr.msra.gmra.mxu3 %vm306_vm6, %v377_v24 }
  0x2b   : > { %674 = vmatmul.msk.bf16.vlgmr.msrb.gmra.mxu1 %vm306_vm6, %v433_v27 }
  0x2d   : > { %681 = vmatmul.msk.bf16.vlgmr.msrb.gmra.mxu2 %vm306_vm6, %v460_v28 }
  0x31   : > { %667 = vmatmul.msk.bf16.vlgmr.msrb.gmra.mxu0 %vm306_vm6, %v404_v29 }
  0x98   : > { %v340_v36 = vpop.f32.mrf.mxu1 }
  0x9e   : > { %v319_v39 = vpop.f32.mrf.mxu0 }
  0x9f   : > { %v341_v44 = vadd.f32 %v340_v36, %v319_v39 }
  0xa0   : > { %v342_v40 = vpop.f32.mrf.mxu1  ;;  %v367_v41 = vpop.f32.mrf.mxu2 }
  0xa1   : > { %v371_v47 = vadd.f32 %v367_v41, %v341_v44 }
  0xa4   : > { %v396_v42 = vpop.f32.mrf.mxu3 }
  0xa5   : > { %v400_v49 = vadd.f32 %v396_v42, %v371_v47 }
  0xa6   : > { %v321_v43 = vpop.f32.mrf.mxu0 }
  0xa8   : > { %v369_v45 = vpop.f32.mrf.mxu2  ;;  %v452_v46 = vpop.f32.mrf.mxu1 }
  0xac   : > { %v398_v48 = vpop.f32.mrf.mxu3 }
  0xae   : > { %v423_v50 = vpop.f32.mrf.mxu0 }
  0xaf   : > { %v427_v51 = vadd.f32 %v423_v50, %v400_v49 }
  0xb0   : > { %v454_v52 = vpop.f32.mrf.mxu1  ;;  %v479_v53 = vpop.f32.mrf.mxu2 }
  0xb1   : > { %v456_v54 = vadd.f32 %v452_v46, %v427_v51 }
  0xb3   : > { %v483_v56 = vadd.f32 %v479_v53, %v456_v54 }
  0xb5   : > { %v486_v58 = vmul.f32 %v703_v55, %v483_v56 }
  0xb6   : > { %v425_v59 = vpop.f32.mrf.mxu0 }
  0xb7   : > { %v489_v60 = vadd.f32 %v704_v57, %v486_v58 }
  0xb8   : > { %v481_v62 = vpop.f32.mrf.mxu2 }
  0xb9   : > { %v490_v63 = vmax.f32 %v489_v60, 0.0 }
  0xbb   : > { %v492_v0 = vadd.f32 %v491_v61, %v490_v63 }
  0xbd   : > { %682 = vmatmul.msk.f32.vlgmr.msrb.gmra.mxu3 %vm501_vm7, %v492_v0 }
 0x140   : > { %v522_v2 = vpop.f32.mrf.mxu3 }
 0x141   : > { %549 = vmatpush.msra.mxu3 %v522_v2 }
 0x142   : > { %683 = vmatmul.msk.f32.vlgmr.msra.gmra.mxu3 %vm527_vm8, %v525_v1 }
 0x14a   : > { %684 = vmatmul.msk.f32.gmra.mxu3 %vm527_vm8, %v526_v3 }
 0x1c5   : > { %v551_v4 = vpop.f32.mrf.mxu3 }
 0x1c6   : > { %557 = vst [vmem:[%s265_s28] sm:$0xff] %v551_v4 }
 0x1cd   : > { %v554_v5 = vpop.f32.mrf.mxu3 }
 0x1ce   : > { %558 = vst [vmem:[%s265_s28 + $0x8] sm:$0xff] %v554_v5 }
 0x1cf PF: > { %s16_s21 = sadd.s32 1, %s711_s21  }
 0x1d0   : > { %p13_p4 = scmp.ge.s32.totalorder %s16_s21, 4  }
 0x1d2   :  { %15 = sbr.rel (!%p13_p4) target bundleno = 1 (0x1), region = 83 }

</bundles_post_ra>
